<compile_context>
chip_gen: v6e
topology: v6e:2x2x1
jax: 0.10.0
libtpu: 0.0.40
codegen_flags: <defaults>
</compile_context>

<pallas_src>
import jax
import jax.numpy as jnp
import numpy as np
from jax import lax
from jax.experimental import pallas as pl
from jax.experimental.pallas import tpu as pltpu

EPS = 1e-5          # nn.BatchNorm2d default eps
NEG_SLOPE = 0.01    # nn.LeakyReLU default negative_slope


def _leaky_relu(x):
    return jnp.where(x >= 0, x, NEG_SLOPE * x)


def basic_block_kernel(x_ref, bw1_ref, bw2_ref, g1_ref, b1_ref, g2_ref, b2_ref,
                       pool_ref, bcast_ref, out_ref, pad_ref):
    # x_ref    : (N, H, W*C)   lane-dense input (W and C merged on the lane axis)
    # bw*_ref  : (3, W*C, W*C) banded conv weights, one matrix per kernel row kh
    #                          (kw taps + width zero-padding baked into the band)
    # g*/b*    : (1, C)        BN gamma / beta
    # pool_ref : (W*C, C)      one-hot map summing lane w*C+c -> channel c
    # bcast_ref: (C, W*C)      one-hot map broadcasting channel c -> lanes w*C+c
    # out_ref  : (N*H, W*C)
    # pad_ref  : (N, H+2, W*C) VMEM scratch holding the height-padded activation
    N, H, WC = x_ref.shape
    C = g1_ref.shape[1]
    W = WC // C
    NH = N * H
    inv_cnt = 1.0 / float(N * H * W)

    # Zero only the two halo rows of the scratch; the interior is always overwritten.
    pad_ref[:, 0:1, :] = jnp.zeros((N, 1, WC), jnp.float32)
    pad_ref[:, H + 1:H + 2, :] = jnp.zeros((N, 1, WC), jnp.float32)

    def conv3x3(bw_ref):
        # 3 full-K (W*C) MXU matmuls; the kw taps and the W boundary live in the band.
        p = pad_ref[...]                                     # (N, H+2, WC)
        acc = jnp.zeros((NH, WC), jnp.float32)
        for kh in range(3):
            lhs = p[:, kh:kh + H, :].reshape(NH, WC)
            acc = acc + jnp.dot(lhs, bw_ref[kh],
                                preferred_element_type=jnp.float32)
        return acc                                           # (NH, WC)

    def bn_train(y, g_ref, b_ref):
        # Single-pass batch statistics (sum / sum-of-squares) folded into one
        # per-channel scale + shift; biased variance = training-mode BatchNorm2d.
        s = jnp.sum(y, axis=0, keepdims=True)                # (1, WC)
        ss = jnp.sum(y * y, axis=0, keepdims=True)           # (1, WC)
        s_c = jnp.dot(s, pool_ref[...], preferred_element_type=jnp.float32)    # (1, C)
        ss_c = jnp.dot(ss, pool_ref[...], preferred_element_type=jnp.float32)  # (1, C)
        mean = s_c * inv_cnt
        var = ss_c * inv_cnt - mean * mean
        scale = g_ref[...] * lax.rsqrt(var + EPS)            # (1, C)
        shift = b_ref[...] - mean * scale                    # (1, C)
        scale_b = jnp.dot(scale, bcast_ref[...], preferred_element_type=jnp.float32)  # (1, WC)
        shift_b = jnp.dot(shift, bcast_ref[...], preferred_element_type=jnp.float32)  # (1, WC)
        return y * scale_b + shift_b

    # conv1 -> bn1 -> leaky_relu
    pad_ref[:, 1:1 + H, :] = x_ref[...]
    y1 = _leaky_relu(bn_train(conv3x3(bw1_ref), g1_ref, b1_ref))     # (NH, WC)

    # conv2 -> bn2
    pad_ref[:, 1:1 + H, :] = y1.reshape(N, H, WC)
    y2 = bn_train(conv3x3(bw2_ref), g2_ref, b2_ref)                  # (NH, WC)

    # residual add (downsample is None) + final leaky_relu; lane-dense aligned store.
    out_ref[...] = _leaky_relu(y2 + x_ref[...].reshape(NH, WC))


def make_banded_weights(w, W):
    """Pack a PyTorch OIHW 3x3 weight (Cout, Cin, 3, 3) into 3 banded matrices,
    one per kernel row kh, of shape (W*Cin, W*Cout):
        band[kh][(w+kw-1)*Cin + ci, w*Cout + co] = w[co, ci, kh, kw]
    with out-of-range width blocks dropped (== zero padding along W)."""
    cout, cin, _, _ = w.shape
    eye_w = jnp.eye(W, dtype=jnp.float32)
    mats = []
    for kh in range(3):
        m = jnp.zeros((W * cin, W * cout), jnp.float32)
        for kw in range(3):
            tap = w[:, :, kh, kw].T.astype(jnp.float32)        # (Cin, Cout)
            bd = jnp.kron(eye_w, tap)                          # block-diagonal
            if kw == 0:    # reads input column w-1: shift blocks up by one
                bd = jnp.concatenate(
                    [bd[cin:, :], jnp.zeros((cin, W * cout), jnp.float32)], axis=0)
            elif kw == 2:  # reads input column w+1: shift blocks down by one
                bd = jnp.concatenate(
                    [jnp.zeros((cin, W * cout), jnp.float32), bd[:-cin, :]], axis=0)
            m = m + bd
        mats.append(m)
    return jnp.stack(mats, axis=0)                             # (3, W*Cin, W*Cout)


def basic_block_forward(x_nchw, params):
    """x_nchw: (N, C, H, W) float32, matching the PyTorch calling convention."""
    w1, g1, b1, w2, g2, b2 = params
    N, C, H, W = x_nchw.shape
    WC = W * C

    # NCHW -> lane-dense (N, H, W*C): channels minor on the lane axis.
    x_lane = jnp.transpose(x_nchw, (0, 2, 3, 1)).reshape(N, H, WC).astype(jnp.float32)

    bw1 = make_banded_weights(w1, W)                           # (3, WC, WC)
    bw2 = make_banded_weights(w2, W)

    # One-hot lane<->channel maps used for the BN per-channel reduce / broadcast.
    pool = jnp.tile(jnp.eye(C, dtype=jnp.float32), (W, 1))     # (WC, C)
    bcast = jnp.transpose(pool)                                # (C, WC)

    args = (x_lane, bw1, bw2,
            g1.reshape(1, C).astype(jnp.float32), b1.reshape(1, C).astype(jnp.float32),
            g2.reshape(1, C).astype(jnp.float32), b2.reshape(1, C).astype(jnp.float32),
            pool, bcast)

    out2d = pl.pallas_call(
        basic_block_kernel,
        out_shape=jax.ShapeDtypeStruct((N * H, WC), jnp.float32),
        in_specs=[pl.BlockSpec(memory_space=pltpu.MemorySpace.VMEM)] * len(args),
        out_specs=pl.BlockSpec(memory_space=pltpu.MemorySpace.VMEM),
        scratch_shapes=[pltpu.VMEM((N, H + 2, WC), jnp.float32)],
    )(*args)

    out_nhwc = out2d.reshape(N, H, W, C)
    return jnp.transpose(out_nhwc, (0, 3, 1, 2))


def reference_forward(x_nchw, params):
    """Pure-JAX reference reproducing the PyTorch BasicBlock (training-mode BN)."""
    w1, g1, b1, w2, g2, b2 = params

    def conv(x, w):
        return lax.conv_general_dilated(
            x, w, window_strides=(1, 1), padding='SAME',
            dimension_numbers=('NCHW', 'OIHW', 'NCHW'))

    def bn(x, g, b):
        mean = jnp.mean(x, axis=(0, 2, 3), keepdims=True)
        var = jnp.mean((x - mean) ** 2, axis=(0, 2, 3), keepdims=True)
        return ((x - mean) * lax.rsqrt(var + EPS) * g.reshape(1, -1, 1, 1)
                + b.reshape(1, -1, 1, 1))

    out = _leaky_relu(bn(conv(x_nchw, w1), g1, b1))
    out = bn(conv(out, w2), g2, b2)
    return _leaky_relu(out + x_nchw)


if __name__ == "__main__":
    # inplanes = planes = 8, stride = 1, downsample = None; W*C = 128 (lane-dense)
    N, C, H, W = 2, 8, 16, 16
    key = jax.random.PRNGKey(0)
    kx, k1, k2, kg1, kb1, kg2, kb2 = jax.random.split(key, 7)

    x = jax.random.normal(kx, (N, C, H, W), dtype=jnp.float32)
    w1 = 0.1 * jax.random.normal(k1, (C, C, 3, 3), dtype=jnp.float32)
    w2 = 0.1 * jax.random.normal(k2, (C, C, 3, 3), dtype=jnp.float32)
    g1 = 1.0 + 0.1 * jax.random.normal(kg1, (C,), dtype=jnp.float32)
    b1 = 0.1 * jax.random.normal(kb1, (C,), dtype=jnp.float32)
    g2 = 1.0 + 0.1 * jax.random.normal(kg2, (C,), dtype=jnp.float32)
    b2 = 0.1 * jax.random.normal(kb2, (C,), dtype=jnp.float32)
    params = (w1, g1, b1, w2, g2, b2)

    out = jax.block_until_ready(basic_block_forward(x, params))
    ref = jax.block_until_ready(reference_forward(x, params))
    np.testing.assert_allclose(np.asarray(out), np.asarray(ref), atol=1e-2, rtol=1e-2)
    print("KERNEL_OK")
</pallas_src>

<mosaic_0001>
module attributes {stable_mosaic.version = 11 : i64} {
  func.func @basic_block_kernel(%arg0: memref<2x16x128xf32, #tpu.memory_space<vmem>>, %arg1: memref<3x128x128xf32, #tpu.memory_space<vmem>>, %arg2: memref<3x128x128xf32, #tpu.memory_space<vmem>>, %arg3: memref<1x8xf32, #tpu.memory_space<vmem>>, %arg4: memref<1x8xf32, #tpu.memory_space<vmem>>, %arg5: memref<1x8xf32, #tpu.memory_space<vmem>>, %arg6: memref<1x8xf32, #tpu.memory_space<vmem>>, %arg7: memref<128x8xf32, #tpu.memory_space<vmem>>, %arg8: memref<8x128xf32, #tpu.memory_space<vmem>>, %arg9: memref<32x128xf32, #tpu.memory_space<vmem>>, %arg10: memref<2x18x128xf32, #tpu.memory_space<vmem>>) attributes {dimension_semantics = [], scalar_prefetch = 0 : i64, scratch_operands = 1 : i64, tpu.core_type = #tpu.core_type<tc>} {
    %cst = arith.constant 0.000000e+00 : f32
    %0 = vector.broadcast %cst : f32 to vector<2x1x128xf32>
    %c0 = arith.constant 0 : index
    %c0_0 = arith.constant 0 : index
    %c0_1 = arith.constant 0 : index
    %1 = vector.load %arg10[%c0, %c0_0, %c0_1] : memref<2x18x128xf32, #tpu.memory_space<vmem>>, vector<2x1x128xf32>
    tpu.vector_store %arg10[%c0, %c0_0, %c0_1], %0 {strides = array<i32>} : memref<2x18x128xf32, #tpu.memory_space<vmem>>, vector<2x1x128xf32>,
    %cst_2 = arith.constant 0.000000e+00 : f32
    %2 = vector.broadcast %cst_2 : f32 to vector<2x1x128xf32>
    %c0_3 = arith.constant 0 : index
    %c17 = arith.constant 17 : index
    %c0_4 = arith.constant 0 : index
    %3 = vector.load %arg10[%c0_3, %c17, %c0_4] : memref<2x18x128xf32, #tpu.memory_space<vmem>>, vector<2x1x128xf32>
    tpu.vector_store %arg10[%c0_3, %c17, %c0_4], %2 {strides = array<i32>} : memref<2x18x128xf32, #tpu.memory_space<vmem>>, vector<2x1x128xf32>,
    %c0_5 = arith.constant 0 : index
    %c0_6 = arith.constant 0 : index
    %c0_7 = arith.constant 0 : index
    %4 = vector.load %arg0[%c0_5, %c0_6, %c0_7] : memref<2x16x128xf32, #tpu.memory_space<vmem>>, vector<2x16x128xf32>
    %c0_8 = arith.constant 0 : index
    %c1 = arith.constant 1 : index
    %c0_9 = arith.constant 0 : index
    %5 = vector.load %arg10[%c0_8, %c1, %c0_9] : memref<2x18x128xf32, #tpu.memory_space<vmem>>, vector<2x16x128xf32>
    tpu.vector_store %arg10[%c0_8, %c1, %c0_9], %4 {strides = array<i32>} : memref<2x18x128xf32, #tpu.memory_space<vmem>>, vector<2x16x128xf32>,
    %c0_10 = arith.constant 0 : index
    %c0_11 = arith.constant 0 : index
    %c0_12 = arith.constant 0 : index
    %6 = vector.load %arg10[%c0_10, %c0_11, %c0_12] : memref<2x18x128xf32, #tpu.memory_space<vmem>>, vector<2x18x128xf32>
    %cst_13 = arith.constant 0.000000e+00 : f32
    %7 = vector.broadcast %cst_13 : f32 to vector<32x128xf32>
    %8 = vector.extract_strided_slice %6 {offsets = [0, 0, 0], sizes = [2, 16, 128], strides = [1, 1, 1]} : vector<2x18x128xf32> to vector<2x16x128xf32>
    %9 = vector.shape_cast %8 : vector<2x16x128xf32> to vector<32x128xf32>
    %c0_14 = arith.constant 0 : index
    %c0_15 = arith.constant 0 : index
    %c0_16 = arith.constant 0 : index
    %10 = vector.load %arg1[%c0_14, %c0_15, %c0_16] : memref<3x128x128xf32, #tpu.memory_space<vmem>>, vector<1x128x128xf32>
    %11 = vector.shape_cast %10 : vector<1x128x128xf32> to vector<128x128xf32>
    %cst_17 = arith.constant dense<0.000000e+00> : vector<32x128xf32>
    %12 = tpu.matmul %9, %11, %cst_17 {dimension_numbers = #tpu.dot_dimension_numbers<[1], [0], [0], [1], [0, 0, 1, 1], [], []>} : vector<32x128xf32>, vector<128x128xf32>, vector<32x128xf32> -> vector<32x128xf32>
    %13 = arith.addf %7, %12 : vector<32x128xf32>
    %14 = vector.extract_strided_slice %6 {offsets = [0, 1, 0], sizes = [2, 16, 128], strides = [1, 1, 1]} : vector<2x18x128xf32> to vector<2x16x128xf32>
    %15 = vector.shape_cast %14 : vector<2x16x128xf32> to vector<32x128xf32>
    %c1_18 = arith.constant 1 : index
    %c0_19 = arith.constant 0 : index
    %c0_20 = arith.constant 0 : index
    %16 = vector.load %arg1[%c1_18, %c0_19, %c0_20] : memref<3x128x128xf32, #tpu.memory_space<vmem>>, vector<1x128x128xf32>
    %17 = vector.shape_cast %16 : vector<1x128x128xf32> to vector<128x128xf32>
    %cst_21 = arith.constant dense<0.000000e+00> : vector<32x128xf32>
    %18 = tpu.matmul %15, %17, %cst_21 {dimension_numbers = #tpu.dot_dimension_numbers<[1], [0], [0], [1], [0, 0, 1, 1], [], []>} : vector<32x128xf32>, vector<128x128xf32>, vector<32x128xf32> -> vector<32x128xf32>
    %19 = arith.addf %13, %18 : vector<32x128xf32>
    %20 = vector.extract_strided_slice %6 {offsets = [0, 2, 0], sizes = [2, 16, 128], strides = [1, 1, 1]} : vector<2x18x128xf32> to vector<2x16x128xf32>
    %21 = vector.shape_cast %20 : vector<2x16x128xf32> to vector<32x128xf32>
    %c2 = arith.constant 2 : index
    %c0_22 = arith.constant 0 : index
    %c0_23 = arith.constant 0 : index
    %22 = vector.load %arg1[%c2, %c0_22, %c0_23] : memref<3x128x128xf32, #tpu.memory_space<vmem>>, vector<1x128x128xf32>
    %23 = vector.shape_cast %22 : vector<1x128x128xf32> to vector<128x128xf32>
    %cst_24 = arith.constant dense<0.000000e+00> : vector<32x128xf32>
    %24 = tpu.matmul %21, %23, %cst_24 {dimension_numbers = #tpu.dot_dimension_numbers<[1], [0], [0], [1], [0, 0, 1, 1], [], []>} : vector<32x128xf32>, vector<128x128xf32>, vector<32x128xf32> -> vector<32x128xf32>
    %25 = arith.addf %19, %24 : vector<32x128xf32>
    %cst_25 = arith.constant dense<0.000000e+00> : vector<128xf32>
    %26 = vector.multi_reduction <add>, %25, %cst_25 [0] : vector<32x128xf32> to vector<128xf32>
    %27 = vector.shape_cast %26 : vector<128xf32> to vector<1x128xf32>
    %28 = arith.mulf %25, %25 : vector<32x128xf32>
    %cst_26 = arith.constant dense<0.000000e+00> : vector<128xf32>
    %29 = vector.multi_reduction <add>, %28, %cst_26 [0] : vector<32x128xf32> to vector<128xf32>
    %30 = vector.shape_cast %29 : vector<128xf32> to vector<1x128xf32>
    %c0_27 = arith.constant 0 : index
    %c0_28 = arith.constant 0 : index
    %31 = vector.load %arg7[%c0_27, %c0_28] : memref<128x8xf32, #tpu.memory_space<vmem>>, vector<128x8xf32>
    %cst_29 = arith.constant dense<0.000000e+00> : vector<1x8xf32>
    %32 = tpu.matmul %27, %31, %cst_29 {dimension_numbers = #tpu.dot_dimension_numbers<[1], [0], [0], [1], [0, 0, 1, 1], [], []>} : vector<1x128xf32>, vector<128x8xf32>, vector<1x8xf32> -> vector<1x8xf32>
    %c0_30 = arith.constant 0 : index
    %c0_31 = arith.constant 0 : index
    %33 = vector.load %arg7[%c0_30, %c0_31] : memref<128x8xf32, #tpu.memory_space<vmem>>, vector<128x8xf32>
    %cst_32 = arith.constant dense<0.000000e+00> : vector<1x8xf32>
    %34 = tpu.matmul %30, %33, %cst_32 {dimension_numbers = #tpu.dot_dimension_numbers<[1], [0], [0], [1], [0, 0, 1, 1], [], []>} : vector<1x128xf32>, vector<128x8xf32>, vector<1x8xf32> -> vector<1x8xf32>
    %cst_33 = arith.constant 0.001953125 : f32
    %35 = vector.broadcast %cst_33 : f32 to vector<1x8xf32>
    %36 = arith.mulf %32, %35 : vector<1x8xf32>
    %cst_34 = arith.constant 0.001953125 : f32
    %37 = vector.broadcast %cst_34 : f32 to vector<1x8xf32>
    %38 = arith.mulf %34, %37 : vector<1x8xf32>
    %39 = arith.mulf %36, %36 : vector<1x8xf32>
    %40 = arith.subf %38, %39 : vector<1x8xf32>
    %c0_35 = arith.constant 0 : index
    %c0_36 = arith.constant 0 : index
    %41 = vector.load %arg3[%c0_35, %c0_36] : memref<1x8xf32, #tpu.memory_space<vmem>>, vector<1x8xf32>
    %cst_37 = arith.constant 9.99999974E-6 : f32
    %42 = vector.broadcast %cst_37 : f32 to vector<1x8xf32>
    %43 = arith.addf %40, %42 : vector<1x8xf32>
    %44 = math.rsqrt %43 : vector<1x8xf32>
    %45 = arith.mulf %41, %44 : vector<1x8xf32>
    %c0_38 = arith.constant 0 : index
    %c0_39 = arith.constant 0 : index
    %46 = vector.load %arg4[%c0_38, %c0_39] : memref<1x8xf32, #tpu.memory_space<vmem>>, vector<1x8xf32>
    %47 = arith.mulf %36, %45 : vector<1x8xf32>
    %48 = arith.subf %46, %47 : vector<1x8xf32>
    %c0_40 = arith.constant 0 : index
    %c0_41 = arith.constant 0 : index
    %49 = vector.load %arg8[%c0_40, %c0_41] : memref<8x128xf32, #tpu.memory_space<vmem>>, vector<8x128xf32>
    %cst_42 = arith.constant dense<0.000000e+00> : vector<1x128xf32>
    %50 = tpu.matmul %45, %49, %cst_42 {dimension_numbers = #tpu.dot_dimension_numbers<[1], [0], [0], [1], [0, 0, 1, 1], [], []>} : vector<1x8xf32>, vector<8x128xf32>, vector<1x128xf32> -> vector<1x128xf32>
    %c0_43 = arith.constant 0 : index
    %c0_44 = arith.constant 0 : index
    %51 = vector.load %arg8[%c0_43, %c0_44] : memref<8x128xf32, #tpu.memory_space<vmem>>, vector<8x128xf32>
    %cst_45 = arith.constant dense<0.000000e+00> : vector<1x128xf32>
    %52 = tpu.matmul %48, %51, %cst_45 {dimension_numbers = #tpu.dot_dimension_numbers<[1], [0], [0], [1], [0, 0, 1, 1], [], []>} : vector<1x8xf32>, vector<8x128xf32>, vector<1x128xf32> -> vector<1x128xf32>
    %53 = vector.broadcast %50 : vector<1x128xf32> to vector<32x128xf32>
    %54 = arith.mulf %25, %53 : vector<32x128xf32>
    %55 = vector.broadcast %52 : vector<1x128xf32> to vector<32x128xf32>
    %56 = arith.addf %54, %55 : vector<32x128xf32>
    %cst_46 = arith.constant 0.000000e+00 : f32
    %57 = vector.broadcast %cst_46 : f32 to vector<32x128xf32>
    %58 = arith.cmpf oge, %56, %57 : vector<32x128xf32>
    %cst_47 = arith.constant 0.00999999977 : f32
    %59 = vector.broadcast %cst_47 : f32 to vector<32x128xf32>
    %60 = arith.mulf %59, %56 : vector<32x128xf32>
    %61 = arith.select %58, %56, %60 : vector<32x128xi1>, vector<32x128xf32>
    %62 = vector.shape_cast %61 : vector<32x128xf32> to vector<2x16x128xf32>
    %c0_48 = arith.constant 0 : index
    %c1_49 = arith.constant 1 : index
    %c0_50 = arith.constant 0 : index
    %63 = vector.load %arg10[%c0_48, %c1_49, %c0_50] : memref<2x18x128xf32, #tpu.memory_space<vmem>>, vector<2x16x128xf32>
    tpu.vector_store %arg10[%c0_48, %c1_49, %c0_50], %62 {strides = array<i32>} : memref<2x18x128xf32, #tpu.memory_space<vmem>>, vector<2x16x128xf32>,
    %c0_51 = arith.constant 0 : index
    %c0_52 = arith.constant 0 : index
    %c0_53 = arith.constant 0 : index
    %64 = vector.load %arg10[%c0_51, %c0_52, %c0_53] : memref<2x18x128xf32, #tpu.memory_space<vmem>>, vector<2x18x128xf32>
    %cst_54 = arith.constant 0.000000e+00 : f32
    %65 = vector.broadcast %cst_54 : f32 to vector<32x128xf32>
    %66 = vector.extract_strided_slice %64 {offsets = [0, 0, 0], sizes = [2, 16, 128], strides = [1, 1, 1]} : vector<2x18x128xf32> to vector<2x16x128xf32>
    %67 = vector.shape_cast %66 : vector<2x16x128xf32> to vector<32x128xf32>
    %c0_55 = arith.constant 0 : index
    %c0_56 = arith.constant 0 : index
    %c0_57 = arith.constant 0 : index
    %68 = vector.load %arg2[%c0_55, %c0_56, %c0_57] : memref<3x128x128xf32, #tpu.memory_space<vmem>>, vector<1x128x128xf32>
    %69 = vector.shape_cast %68 : vector<1x128x128xf32> to vector<128x128xf32>
    %cst_58 = arith.constant dense<0.000000e+00> : vector<32x128xf32>
    %70 = tpu.matmul %67, %69, %cst_58 {dimension_numbers = #tpu.dot_dimension_numbers<[1], [0], [0], [1], [0, 0, 1, 1], [], []>} : vector<32x128xf32>, vector<128x128xf32>, vector<32x128xf32> -> vector<32x128xf32>
    %71 = arith.addf %65, %70 : vector<32x128xf32>
    %72 = vector.extract_strided_slice %64 {offsets = [0, 1, 0], sizes = [2, 16, 128], strides = [1, 1, 1]} : vector<2x18x128xf32> to vector<2x16x128xf32>
    %73 = vector.shape_cast %72 : vector<2x16x128xf32> to vector<32x128xf32>
    %c1_59 = arith.constant 1 : index
    %c0_60 = arith.constant 0 : index
    %c0_61 = arith.constant 0 : index
    %74 = vector.load %arg2[%c1_59, %c0_60, %c0_61] : memref<3x128x128xf32, #tpu.memory_space<vmem>>, vector<1x128x128xf32>
    %75 = vector.shape_cast %74 : vector<1x128x128xf32> to vector<128x128xf32>
    %cst_62 = arith.constant dense<0.000000e+00> : vector<32x128xf32>
    %76 = tpu.matmul %73, %75, %cst_62 {dimension_numbers = #tpu.dot_dimension_numbers<[1], [0], [0], [1], [0, 0, 1, 1], [], []>} : vector<32x128xf32>, vector<128x128xf32>, vector<32x128xf32> -> vector<32x128xf32>
    %77 = arith.addf %71, %76 : vector<32x128xf32>
    %78 = vector.extract_strided_slice %64 {offsets = [0, 2, 0], sizes = [2, 16, 128], strides = [1, 1, 1]} : vector<2x18x128xf32> to vector<2x16x128xf32>
    %79 = vector.shape_cast %78 : vector<2x16x128xf32> to vector<32x128xf32>
    %c2_63 = arith.constant 2 : index
    %c0_64 = arith.constant 0 : index
    %c0_65 = arith.constant 0 : index
    %80 = vector.load %arg2[%c2_63, %c0_64, %c0_65] : memref<3x128x128xf32, #tpu.memory_space<vmem>>, vector<1x128x128xf32>
    %81 = vector.shape_cast %80 : vector<1x128x128xf32> to vector<128x128xf32>
    %cst_66 = arith.constant dense<0.000000e+00> : vector<32x128xf32>
    %82 = tpu.matmul %79, %81, %cst_66 {dimension_numbers = #tpu.dot_dimension_numbers<[1], [0], [0], [1], [0, 0, 1, 1], [], []>} : vector<32x128xf32>, vector<128x128xf32>, vector<32x128xf32> -> vector<32x128xf32>
    %83 = arith.addf %77, %82 : vector<32x128xf32>
    %cst_67 = arith.constant dense<0.000000e+00> : vector<128xf32>
    %84 = vector.multi_reduction <add>, %83, %cst_67 [0] : vector<32x128xf32> to vector<128xf32>
    %85 = vector.shape_cast %84 : vector<128xf32> to vector<1x128xf32>
    %86 = arith.mulf %83, %83 : vector<32x128xf32>
    %cst_68 = arith.constant dense<0.000000e+00> : vector<128xf32>
    %87 = vector.multi_reduction <add>, %86, %cst_68 [0] : vector<32x128xf32> to vector<128xf32>
    %88 = vector.shape_cast %87 : vector<128xf32> to vector<1x128xf32>
    %c0_69 = arith.constant 0 : index
    %c0_70 = arith.constant 0 : index
    %89 = vector.load %arg7[%c0_69, %c0_70] : memref<128x8xf32, #tpu.memory_space<vmem>>, vector<128x8xf32>
    %cst_71 = arith.constant dense<0.000000e+00> : vector<1x8xf32>
    %90 = tpu.matmul %85, %89, %cst_71 {dimension_numbers = #tpu.dot_dimension_numbers<[1], [0], [0], [1], [0, 0, 1, 1], [], []>} : vector<1x128xf32>, vector<128x8xf32>, vector<1x8xf32> -> vector<1x8xf32>
    %c0_72 = arith.constant 0 : index
    %c0_73 = arith.constant 0 : index
    %91 = vector.load %arg7[%c0_72, %c0_73] : memref<128x8xf32, #tpu.memory_space<vmem>>, vector<128x8xf32>
    %cst_74 = arith.constant dense<0.000000e+00> : vector<1x8xf32>
    %92 = tpu.matmul %88, %91, %cst_74 {dimension_numbers = #tpu.dot_dimension_numbers<[1], [0], [0], [1], [0, 0, 1, 1], [], []>} : vector<1x128xf32>, vector<128x8xf32>, vector<1x8xf32> -> vector<1x8xf32>
    %cst_75 = arith.constant 0.001953125 : f32
    %93 = vector.broadcast %cst_75 : f32 to vector<1x8xf32>
    %94 = arith.mulf %90, %93 : vector<1x8xf32>
    %cst_76 = arith.constant 0.001953125 : f32
    %95 = vector.broadcast %cst_76 : f32 to vector<1x8xf32>
    %96 = arith.mulf %92, %95 : vector<1x8xf32>
    %97 = arith.mulf %94, %94 : vector<1x8xf32>
    %98 = arith.subf %96, %97 : vector<1x8xf32>
    %c0_77 = arith.constant 0 : index
    %c0_78 = arith.constant 0 : index
    %99 = vector.load %arg5[%c0_77, %c0_78] : memref<1x8xf32, #tpu.memory_space<vmem>>, vector<1x8xf32>
    %cst_79 = arith.constant 9.99999974E-6 : f32
    %100 = vector.broadcast %cst_79 : f32 to vector<1x8xf32>
    %101 = arith.addf %98, %100 : vector<1x8xf32>
    %102 = math.rsqrt %101 : vector<1x8xf32>
    %103 = arith.mulf %99, %102 : vector<1x8xf32>
    %c0_80 = arith.constant 0 : index
    %c0_81 = arith.constant 0 : index
    %104 = vector.load %arg6[%c0_80, %c0_81] : memref<1x8xf32, #tpu.memory_space<vmem>>, vector<1x8xf32>
    %105 = arith.mulf %94, %103 : vector<1x8xf32>
    %106 = arith.subf %104, %105 : vector<1x8xf32>
    %c0_82 = arith.constant 0 : index
    %c0_83 = arith.constant 0 : index
    %107 = vector.load %arg8[%c0_82, %c0_83] : memref<8x128xf32, #tpu.memory_space<vmem>>, vector<8x128xf32>
    %cst_84 = arith.constant dense<0.000000e+00> : vector<1x128xf32>
    %108 = tpu.matmul %103, %107, %cst_84 {dimension_numbers = #tpu.dot_dimension_numbers<[1], [0], [0], [1], [0, 0, 1, 1], [], []>} : vector<1x8xf32>, vector<8x128xf32>, vector<1x128xf32> -> vector<1x128xf32>
    %c0_85 = arith.constant 0 : index
    %c0_86 = arith.constant 0 : index
    %109 = vector.load %arg8[%c0_85, %c0_86] : memref<8x128xf32, #tpu.memory_space<vmem>>, vector<8x128xf32>
    %cst_87 = arith.constant dense<0.000000e+00> : vector<1x128xf32>
    %110 = tpu.matmul %106, %109, %cst_87 {dimension_numbers = #tpu.dot_dimension_numbers<[1], [0], [0], [1], [0, 0, 1, 1], [], []>} : vector<1x8xf32>, vector<8x128xf32>, vector<1x128xf32> -> vector<1x128xf32>
    %111 = vector.broadcast %108 : vector<1x128xf32> to vector<32x128xf32>
    %112 = arith.mulf %83, %111 : vector<32x128xf32>
    %113 = vector.broadcast %110 : vector<1x128xf32> to vector<32x128xf32>
    %114 = arith.addf %112, %113 : vector<32x128xf32>
    %c0_88 = arith.constant 0 : index
    %c0_89 = arith.constant 0 : index
    %c0_90 = arith.constant 0 : index
    %115 = vector.load %arg0[%c0_88, %c0_89, %c0_90] : memref<2x16x128xf32, #tpu.memory_space<vmem>>, vector<2x16x128xf32>
    %116 = vector.shape_cast %115 : vector<2x16x128xf32> to vector<32x128xf32>
    %117 = arith.addf %114, %116 : vector<32x128xf32>
    %cst_91 = arith.constant 0.000000e+00 : f32
    %118 = vector.broadcast %cst_91 : f32 to vector<32x128xf32>
    %119 = arith.cmpf oge, %117, %118 : vector<32x128xf32>
    %cst_92 = arith.constant 0.00999999977 : f32
    %120 = vector.broadcast %cst_92 : f32 to vector<32x128xf32>
    %121 = arith.mulf %120, %117 : vector<32x128xf32>
    %122 = arith.select %119, %117, %121 : vector<32x128xi1>, vector<32x128xf32>
    %c0_93 = arith.constant 0 : index
    %c0_94 = arith.constant 0 : index
    %123 = vector.load %arg9[%c0_93, %c0_94] : memref<32x128xf32, #tpu.memory_space<vmem>>, vector<32x128xf32>
    tpu.vector_store %arg9[%c0_93, %c0_94], %122 {strides = array<i32>} : memref<32x128xf32, #tpu.memory_space<vmem>>, vector<32x128xf32>,
    return
  }
}

</mosaic_0001>

<bundles_post_ra>
// kernel: tpu_custom_call.1
= control target key start
LH: loop header
LB: loop body
LE: loop exit
PB: predicated region body
PF: predicated region fallthrough
CT: control target
= control target key end

     0   :  { %14 = vsyncpa [#allocation4], 0  ;;  %s2653_s0 = inlined_call_operand.vmem [shape: f32[2,16,128], index: 0, kind: input, shape index: {}]   ;;  %s2654_s1 = inlined_call_operand.hbm [shape: f32[3,128,128], index: 1, kind: input, shape index: {}]   ;;  %s2655_s2 = inlined_call_operand.hbm [shape: f32[3,128,128], index: 2, kind: input, shape index: {}]   ;;  %s2656_s3 = inlined_call_operand.vmem [shape: f32[1,8], index: 3, kind: input, shape index: {}]   ;;  %s2657_s4 = inlined_call_operand.vmem [shape: f32[1,8], index: 4, kind: input, shape index: {}]   ;;  %s2658_s5 = inlined_call_operand.vmem [shape: f32[1,8], index: 5, kind: input, shape index: {}]   ;;  %s2659_s6 = inlined_call_operand.vmem [shape: f32[1,8], index: 6, kind: input, shape index: {}]   ;;  %s2660_s7 = inlined_call_operand.vmem [shape: f32[128,8], index: 7, kind: input, shape index: {}]   ;;  %s2661_s8 = inlined_call_operand.vmem [shape: f32[8,128], index: 8, kind: input, shape index: {}]   ;;  %s2662_s9 = inlined_call_operand.hbm [shape: f32[32,128], index: 9, kind: output, shape index: {}]  }
   0x1   :  { %15 = vsyncpa [#allocation7], 0 }
   0x2   :  { %16 = vsyncpa [#allocation5], 0  ;;  %s2201_s30 = smov [#allocation3]  }
   0x3   :  { %s24_s10 = sshll.u32 %s2201_s30, 4  ;;  %s25_s10 = int_to_ptr.vmem [resolvable:$true] %s24_s10 }
   0x4   :  { %s2143_s11 = scalar_lea.vmem %s25_s10, 6144  ;;  %p2148_p1 = scmp.lt.s32.totalorder %s25_s10, %s25_s10 }
   0x5   :  { %p2144_p0 = scmp.ne.s32.totalorder %s25_s10, %s2143_s11  ;;  %p2149_p2 = scmp.lt.s32.totalorder %s2143_s11, %s2143_s11 }
   0x7   :  { %p2150_p3 = por %p2149_p2, %p2148_p1 }
   0x9   :  { %p2151_p4 = pnand %p2150_p3, %p2144_p0 }
   0xb   :  { %2154 = shalt.err (!%p2151_p4)
}
   0xc   :  { %s2202_s12 = smov 128   ;;  %s2203_s13 = smov 8  }
   0xd   :  { %30 = dma.hbm_to_vmem [thread:$0]  %s2654_s1, 6144, %s25_s10, [#allocation4], %s2202_s12, %s2202_s12, %s2203_s13  }
   0xe   :  { %s2204_s16 = smov [#allocation6]  }
   0xf   :  { %s36_s17 = sshll.u32 %s2204_s16, 4  ;;  %s37_s17 = int_to_ptr.vmem [resolvable:$true] %s36_s17 }
  0x10   :  { %s2163_s18 = scalar_lea.vmem %s37_s17, 6144  ;;  %p2168_p6 = scmp.lt.s32.totalorder %s37_s17, %s37_s17 }
  0x11   :  { %p2164_p5 = scmp.ne.s32.totalorder %s37_s17, %s2163_s18  ;;  %p2169_p7 = scmp.lt.s32.totalorder %s2163_s18, %s2163_s18 }
  0x13   :  { %p2170_p8 = por %p2169_p7, %p2168_p6 }
  0x15   :  { %p2171_p9 = pnand %p2170_p8, %p2164_p5 }
  0x17   :  { %2174 = shalt.err (!%p2171_p9)
}
  0x18   :  { %42 = dma.hbm_to_vmem [thread:$0]  %s2655_s2, 6144, %s37_s17, [#allocation7], %s2202_s12, %s2202_s12, %s2203_s13  }
  0x19   :  { %2195 = dma.done.wait [#allocation4], 6144  }
  0x1a   :  { %2196 = vsyncadd [#allocation4], 4294961152 }
  0x1b   :  { %2197 = dma.done.wait [#allocation7], 6144  }
  0x1c   :  { %2198 = vsyncadd [#allocation7], 4294961152  ;;  %v2205_v0 = vmov 0.0   ;;  %v132_v1 = vld [vmem:[#allocation3 + $0xf8] sm:$0xff]  ;;  %v131_v3 = vld [vmem:[#allocation3 + $0xf0] sm:$0xff]  ;;  %vm101_vm0 = vcmask 1046528  }
  0x1d   :  { %61 = vst [vmem:[#allocation2] sm:$0x1] %v2205_v0  ;;  %62 = vst [vmem:[#allocation2 + $0x18] sm:$0x1] %v2205_v0  ;;  %v94_v2 = vld [vmem:[#allocation3 + $0x78] sm:$0xff]  ;;  %1736 = vmatprep.subr.mxu0 %v132_v1  ;;  %v93_v4 = vld [vmem:[#allocation3 + $0x70] sm:$0xff] }
  0x1e   :  { %63 = vst [vmem:[#allocation2 + $0x11] sm:$0x1] %v2205_v0  ;;  %64 = vst [vmem:[#allocation2 + $0x29] sm:$0x1] %v2205_v0  ;;  %1774 = vmatprep.subr.mxu1 %v94_v2  ;;  %1737 = vmatpush3.msra.mxu0 %v132_v1  ;;  %v130_v5 = vld [vmem:[#allocation3 + $0xe8] sm:$0xff]  ;;  %v129_v7 = vld [vmem:[#allocation3 + $0xe0] sm:$0xff] }
  0x1f   :  { %1775 = vmatpush3.msra.mxu1 %v94_v2  ;;  %v92_v6 = vld [vmem:[#allocation3 + $0x68] sm:$0xff]  ;;  %1738 = vmatprep.subr.mxu0 %v131_v3  ;;  %v91_v8 = vld [vmem:[#allocation3 + $0x60] sm:$0xff]  ;;  %v128_v9 = vld [vmem:[#allocation3 + $0xd8] sm:$0xff]  ;;  %vm303_vm1 = vcmask 1045504   ;;  %vm2206_vm2 = vmmov 0   ;;  %vm614_vm3 = vcmask 64512  }
  0x20   :  { %1776 = vmatprep.subr.mxu1 %v93_v4  ;;  %1739 = vmatpush3.msra.mxu0 %v131_v3  ;;  %v90_v10 = vld [vmem:[#allocation3 + $0x58] sm:$0xff]  ;;  %v127_v11 = vld [vmem:[#allocation3 + $0xd0] sm:$0xff]  ;;  %v126_v13 = vld [vmem:[#allocation3 + $0xc8] sm:$0xff]  ;;  %s2207_s29 = smov [#allocation8]  }
  0x21   :  { %1777 = vmatpush3.msra.mxu1 %v93_v4  ;;  %1740 = vmatprep.subr.mxu0 %v130_v5  ;;  %v89_v12 = vld [vmem:[#allocation3 + $0x50] sm:$0xff]  ;;  %v88_v14 = vld [vmem:[#allocation3 + $0x48] sm:$0xff]  ;;  %v66_v16 = vld [vmem:[%s2653_s0 + $0x8] sm:$0xff]  ;;  %s1523_s30 = sshll.u32 %s2207_s29, 4  ;;  %s1524_s30 = int_to_ptr.vmem [resolvable:$true] %s1523_s30 }
  0x22   :  { %1778 = vmatprep.subr.mxu1 %v92_v6  ;;  %1741 = vmatpush3.msra.mxu0 %v130_v5  ;;  %v65_v15 = vld [vmem:[%s2653_s0] sm:$0xff]  ;;  %v125_v17 = vld [vmem:[#allocation3 + $0xc0] sm:$0xff]  ;;  %70 = vst [vmem:[#allocation2 + $0x9] sm:$0xff] %v66_v16  ;;  %v124_v19 = vld [vmem:[#allocation3 + $0xb8] sm:$0xff]  ;;  %p2180_p11 = scmp.lt.s32.totalorder %s1524_s30, %s1524_s30 }
  0x23   :  { %1779 = vmatpush3.msra.mxu1 %v92_v6  ;;  %1742 = vmatprep.subr.mxu0 %v129_v7  ;;  %69 = vst [vmem:[#allocation2 + $0x1] sm:$0xff] %v65_v15  ;;  %v87_v18 = vld [vmem:[#allocation3 + $0x40] sm:$0xff]  ;;  %v86_v20 = vld [vmem:[#allocation3 + $0x38] sm:$0xff]  ;;  %v123_v22 = vld [vmem:[#allocation3 + $0xb0] sm:$0xff] }
  0x24   :  { %1780 = vmatprep.subr.mxu1 %v91_v8  ;;  %1743 = vmatpush3.msra.mxu0 %v129_v7  ;;  %v67_v21 = vld [vmem:[%s2653_s0 + $0x10] sm:$0xff]  ;;  %v85_v23 = vld [vmem:[#allocation3 + $0x30] sm:$0xff]  ;;  %v68_v24 = vld [vmem:[%s2653_s0 + $0x18] sm:$0xff] }
  0x25   :  { %1781 = vmatpush3.msra.mxu1 %v91_v8  ;;  %1744 = vmatprep.subr.mxu0 %v128_v9  ;;  %71 = vst [vmem:[#allocation2 + $0x19] sm:$0xff] %v67_v21  ;;  %72 = vst [vmem:[#allocation2 + $0x21] sm:$0xff] %v68_v24  ;;  %v122_v25 = vld [vmem:[#allocation3 + $0xa8] sm:$0xff]  ;;  %v121_v27 = vld [vmem:[#allocation3 + $0xa0] sm:$0xff] }
  0x26   :  { %1782 = vmatprep.subr.mxu1 %v90_v10  ;;  %1745 = vmatpush3.msra.mxu0 %v128_v9  ;;  %v84_v26 = vld [vmem:[#allocation3 + $0x28] sm:$0xff]  ;;  %v83_v28 = vld [vmem:[#allocation3 + $0x20] sm:$0xff]  ;;  %v120_v29 = vld [vmem:[#allocation3 + $0x98] sm:$0xff] }
  0x27   :  { %1783 = vmatpush3.msra.mxu1 %v90_v10  ;;  %1746 = vmatprep.subr.mxu0 %v127_v11  ;;  %v82_v30 = vld [vmem:[#allocation3 + $0x18] sm:$0xff]  ;;  %v119_v33 = vld [vmem:[#allocation3 + $0x90] sm:$0xff]  ;;  %v118_v40 = vld [vmem:[#allocation3 + $0x88] sm:$0xff] }
  0x28   :  { %1784 = vmatprep.subr.mxu1 %v89_v12  ;;  %1747 = vmatpush3.msra.mxu0 %v127_v11  ;;  %v81_v34 = vld [vmem:[#allocation3 + $0x10] sm:$0xff]  ;;  %v80_v41 = vld [vmem:[#allocation3 + $0x8] sm:$0xff]  ;;  %v117_v43 = vld [vmem:[#allocation3 + $0x80] sm:$0xff] }
  0x29   :  { %1785 = vmatpush3.msra.mxu1 %v89_v12  ;;  %1748 = vmatprep.subr.mxu0 %v126_v13  ;;  %v2288_v35 = vld [vmem:[#allocation2 + $0x10] sm:$0x3]  ;;  %v334_v50 = vld [vmem:[#allocation3 + $0x178] sm:$0xff]  ;;  %v333_v55 = vld [vmem:[#allocation3 + $0x170] sm:$0xff] }
  0x2a   :  { %1786 = vmatprep.subr.mxu1 %v88_v14  ;;  %1749 = vmatpush3.msra.mxu0 %v126_v13  ;;  %v73_v31 = vld [vmem:[#allocation2] sm:$0xff]  ;;  %v2286_v32 = vld [vmem:[#allocation2 + $0x8] sm:$0xff]  ;;  %v105_v42 = vrot.slane %v2288_v35, 1  ;;  %v79_v44 = vld [vmem:[#allocation3] sm:$0xff]  ;;  %v307_v8 = vrot.slane %v2288_v35, 2 }
  0x2b   :  { %1787 = vmatpush3.msra.mxu1 %v88_v14  ;;  %1750 = vmatprep.subr.mxu0 %v125_v17  ;;  %v102_v36 = vrot.slane %v73_v31, 1  ;;  %v103_v37 = vrot.slane %v2286_v32, 1  ;;  %v304_v53 = vrot.slane %v73_v31, 2  ;;  %v305_v54 = vrot.slane %v2286_v32, 2  ;;  %v332_v56 = vld [vmem:[#allocation3 + $0x168] sm:$0xff]  ;;  %v331_v59 = vld [vmem:[#allocation3 + $0x160] sm:$0xff] }
  0x2c   :  { %1788 = vmatprep.subr.mxu1 %v87_v18  ;;  %1751 = vmatpush3.msra.mxu0 %v125_v17  ;;  %v2291_v38 = vld [vmem:[#allocation2 + $0x18] sm:$0xff]  ;;  %v2293_v39 = vld [vmem:[#allocation2 + $0x20] sm:$0xff]  ;;  %v2299_v48 = vld [vmem:[#allocation2 + $0x28] sm:$0x3] }
  0x2d   :  { %1789 = vmatpush3.msra.mxu1 %v87_v18  ;;  %1752 = vmatprep.subr.mxu0 %v124_v19  ;;  %v107_v45 = vrot.slane %v2291_v38, 1  ;;  %v108_v46 = vrot.slane %v2293_v39, 1  ;;  %v104_v47 = vsel %vm101_vm0, %v102_v36, %v103_v37  ;;  %v106_v49 = vsel %vm101_vm0, %v103_v37, %v105_v42  ;;  %v330_v60 = vld [vmem:[#allocation3 + $0x158] sm:$0xff]  ;;  %v329_v61 = vld [vmem:[#allocation3 + $0x150] sm:$0xff]  ;;  %v328_v62 = vld [vmem:[#allocation3 + $0x148] sm:$0xff] }
  0x2e   :  { %1790 = vmatprep.subr.mxu1 %v86_v20  ;;  %1753 = vmatpush3.msra.mxu0 %v124_v19  ;;  %v110_v52 = vrot.slane %v2299_v48, 1  ;;  %v306_v58 = vsel %vm303_vm1, %v304_v53, %v305_v54  ;;  %v327_v63 = vld [vmem:[#allocation3 + $0x140] sm:$0xff]  ;;  %v326_v1 = vld [vmem:[#allocation3 + $0x138] sm:$0xff]  ;;  %v325_v2 = vld [vmem:[#allocation3 + $0x130] sm:$0xff]  ;;  %v309_v9 = vrot.slane %v2291_v38, 2  ;;  %v310_v10 = vrot.slane %v2293_v39, 2 }
  0x2f   :  { %1791 = vmatpush3.msra.mxu1 %v86_v20  ;;  %1754 = vmatprep.subr.mxu0 %v123_v22  ;;  %v109_v51 = vsel %vm101_vm0, %v107_v45, %v108_v46  ;;  %v324_v3 = vld [vmem:[#allocation3 + $0x128] sm:$0xff]  ;;  %v323_v4 = vld [vmem:[#allocation3 + $0x120] sm:$0xff]  ;;  %v322_v5 = vld [vmem:[#allocation3 + $0x118] sm:$0xff]  ;;  %v308_v12 = vsel %vm303_vm1, %v305_v54, %v307_v8  ;;  %v312_v13 = vrot.slane %v2299_v48, 2 }
  0x30   :  { %1792 = vmatprep.subr.mxu1 %v85_v23  ;;  %1755 = vmatpush3.msra.mxu0 %v123_v22  ;;  %v111_v57 = vsel %vm101_vm0, %v108_v46, %v110_v52  ;;  %v321_v6 = vld [vmem:[#allocation3 + $0x110] sm:$0xff]  ;;  %v320_v7 = vld [vmem:[#allocation3 + $0x108] sm:$0xff]  ;;  %v319_v11 = vld [vmem:[#allocation3 + $0x100] sm:$0xff]  ;;  %v311_v14 = vsel %vm303_vm1, %v309_v9, %v310_v10 }
  0x31   :  { %1793 = vmatpush3.msra.mxu1 %v85_v23  ;;  %1756 = vmatprep.subr.mxu0 %v122_v25  ;;  %v313_v15 = vsel %vm303_vm1, %v310_v10, %v312_v13  ;;  %v2322_v16 = vld [vmem:[%s2660_s7 + $0x78] sm:$0xff]  ;;  %v2330_v17 = vld [vmem:[%s2660_s7 + $0x70] sm:$0xff]  ;;  %v2336_v18 = vld [vmem:[%s2660_s7 + $0x68] sm:$0xff] }
  0x32   :  { %1794 = vmatprep.subr.mxu1 %v84_v26  ;;  %1757 = vmatpush3.msra.mxu0 %v122_v25  ;;  %v2349_v19 = vld [vmem:[%s2660_s7 + $0x60] sm:$0xff]  ;;  %v2357_v20 = vld [vmem:[%s2660_s7 + $0x58] sm:$0xff]  ;;  %v2366_v21 = vld [vmem:[%s2660_s7 + $0x50] sm:$0xff] }
  0x33   :  { %1795 = vmatpush3.msra.mxu1 %v84_v26  ;;  %1758 = vmatprep.subr.mxu0 %v121_v27  ;;  %v2375_v22 = vld [vmem:[%s2660_s7 + $0x48] sm:$0xff]  ;;  %v2384_v23 = vld [vmem:[%s2660_s7 + $0x40] sm:$0xff]  ;;  %v2393_v24 = vld [vmem:[%s2660_s7 + $0x38] sm:$0xff] }
  0x34   :  { %1796 = vmatprep.subr.mxu1 %v83_v28  ;;  %1759 = vmatpush3.msra.mxu0 %v121_v27  ;;  %v2402_v25 = vld [vmem:[%s2660_s7 + $0x30] sm:$0xff]  ;;  %v2411_v26 = vld [vmem:[%s2660_s7 + $0x28] sm:$0xff]  ;;  %v2420_v27 = vld [vmem:[%s2660_s7 + $0x20] sm:$0xff] }
  0x35   :  { %1797 = vmatpush3.msra.mxu1 %v83_v28  ;;  %1760 = vmatprep.subr.mxu0 %v120_v29  ;;  %v2429_v28 = vld [vmem:[%s2660_s7 + $0x18] sm:$0xff]  ;;  %v813_v13 = vld [vmem:[#allocation6 + $0x70] sm:$0xff] }
  0x36   :  { %1798 = vmatprep.subr.mxu1 %v82_v30  ;;  %1761 = vmatpush3.msra.mxu0 %v120_v29  ;;  %v2438_v29 = vld [vmem:[%s2660_s7 + $0x10] sm:$0xff] }
  0x37   :  { %1799 = vmatpush3.msra.mxu1 %v82_v30  ;;  %1762 = vmatprep.subr.mxu0 %v119_v33  ;;  %v2447_v30 = vld [vmem:[%s2660_s7 + $0x8] sm:$0xff] }
  0x38   :  { %1800 = vmatprep.subr.mxu1 %v81_v34  ;;  %1763 = vmatpush3.msra.mxu0 %v119_v33 }
  0x39   :  { %1801 = vmatpush3.msra.mxu1 %v81_v34  ;;  %1764 = vmatprep.subr.mxu0 %v118_v40 }
  0x3a   :  { %1802 = vmatprep.subr.mxu1 %v80_v41  ;;  %1765 = vmatpush3.msra.mxu0 %v118_v40 }
  0x3b   :  { %1803 = vmatpush3.msra.mxu1 %v80_v41  ;;  %1766 = vmatprep.subr.mxu0 %v117_v43 }
  0x3c   :  { %1804 = vmatprep.subr.mxu1 %v79_v44  ;;  %1767 = vmatpush3.msra.mxu0 %v117_v43 }
  0x3d   :  { %1768 = vmatprep.mubr.f32.mxu0 %v104_v47  ;;  %1805 = vmatpush3.msra.mxu1 %v79_v44 }
  0x3e   :  { %1806 = vmatprep.mubr.f32.mxu1 %v73_v31  ;;  %1769 = vmatmul.mubr.f32.vlgmr.msra.gmra.mxu0 %v106_v49  ;;  %v2453_v31 = vld [vmem:[%s2660_s7] sm:$0xff] }
  0x3f   :  { %1807 = vmatmul.mubr.f32.vlgmr.msra.gmra.mxu1 %v2286_v32  ;;  %1812 = vmatprep.subr.mxu0 %v334_v50 }
  0x40   :  { %1771 = vmatprep.mubr.f32.mxu0 %v109_v51  ;;  %1813 = vmatpush3.msra.mxu0 %v334_v50 }
  0x41   :  { %1809 = vmatprep.mubr.f32.mxu1 %v2291_v38  ;;  %1814 = vmatprep.subr.mxu0 %v333_v55 }
  0x42   :  { %1850 = vmatprep.subr.mxu1 %v2205_v0  ;;  %1815 = vmatpush3.msra.mxu0 %v333_v55 }
  0x43   :  { %1810 = vmatmul.mubr.f32.gmra.mxu1 %v2293_v39  ;;  %1816 = vmatprep.subr.mxu0 %v332_v56 }
  0x44   :  { %1772 = vmatmul.mubr.f32.gmra.mxu0 %v111_v57  ;;  %1851 = vmatpush3.msra.mxu1 %v2322_v16 }
  0x45   :  { %1817 = vmatpush3.msra.mxu0 %v332_v56  ;;  %1844 = vmatprep.mubr.f32.mxu0 %v306_v58 }
  0x46   :  { %1818 = vmatprep.subr.mxu0 %v331_v59  ;;  %1852 = vmatprep.subr.mxu1 %v2205_v0 }
  0x47   :  { %1819 = vmatpush3.msra.mxu0 %v331_v59  ;;  %1853 = vmatpush3.msra.mxu1 %v2330_v17 }
  0x48   :  { %1820 = vmatprep.subr.mxu0 %v330_v60  ;;  %1854 = vmatprep.subr.mxu1 %v2205_v0 }
  0x49   :  { %1821 = vmatpush3.msra.mxu0 %v330_v60  ;;  %1855 = vmatpush3.msra.mxu1 %v2336_v18 }
  0x4a   :  { %1822 = vmatprep.subr.mxu0 %v329_v61  ;;  %1856 = vmatprep.subr.mxu1 %v2205_v0 }
  0x4b   :  { %1823 = vmatpush3.msra.mxu0 %v329_v61  ;;  %1857 = vmatpush3.msra.mxu1 %v2349_v19 }
  0x4c   :  { %1824 = vmatprep.subr.mxu0 %v328_v62  ;;  %1858 = vmatprep.subr.mxu1 %v2205_v0 }
  0x4d   :  { %1825 = vmatpush3.msra.mxu0 %v328_v62  ;;  %1859 = vmatpush3.msra.mxu1 %v2357_v20 }
  0x4e   :  { %1826 = vmatprep.subr.mxu0 %v327_v63  ;;  %1860 = vmatprep.subr.mxu1 %v2205_v0 }
  0x4f   :  { %1827 = vmatpush3.msra.mxu0 %v327_v63  ;;  %1861 = vmatpush3.msra.mxu1 %v2366_v21 }
  0x50   :  { %1828 = vmatprep.subr.mxu0 %v326_v1  ;;  %1862 = vmatprep.subr.mxu1 %v2205_v0 }
  0x51   :  { %1829 = vmatpush3.msra.mxu0 %v326_v1  ;;  %1863 = vmatpush3.msra.mxu1 %v2375_v22 }
  0x52   :  { %1830 = vmatprep.subr.mxu0 %v325_v2  ;;  %1864 = vmatprep.subr.mxu1 %v2205_v0 }
  0x53   :  { %1831 = vmatpush3.msra.mxu0 %v325_v2  ;;  %1865 = vmatpush3.msra.mxu1 %v2384_v23 }
  0x54   :  { %1832 = vmatprep.subr.mxu0 %v324_v3  ;;  %1866 = vmatprep.subr.mxu1 %v2205_v0 }
  0x55   :  { %1833 = vmatpush3.msra.mxu0 %v324_v3  ;;  %1867 = vmatpush3.msra.mxu1 %v2393_v24 }
  0x56   :  { %1834 = vmatprep.subr.mxu0 %v323_v4  ;;  %1868 = vmatprep.subr.mxu1 %v2205_v0 }
  0x57   :  { %1835 = vmatpush3.msra.mxu0 %v323_v4  ;;  %1869 = vmatpush3.msra.mxu1 %v2402_v25 }
  0x58   :  { %1836 = vmatprep.subr.mxu0 %v322_v5  ;;  %1870 = vmatprep.subr.mxu1 %v2205_v0 }
  0x59   :  { %1837 = vmatpush3.msra.mxu0 %v322_v5  ;;  %1871 = vmatpush3.msra.mxu1 %v2411_v26 }
  0x5a   :  { %1838 = vmatprep.subr.mxu0 %v321_v6  ;;  %1872 = vmatprep.subr.mxu1 %v2205_v0 }
  0x5b   :  { %1839 = vmatpush3.msra.mxu0 %v321_v6  ;;  %1873 = vmatpush3.msra.mxu1 %v2420_v27 }
  0x5c   :  { %1840 = vmatprep.subr.mxu0 %v320_v7  ;;  %1874 = vmatprep.subr.mxu1 %v2205_v0 }
  0x5d   :  { %1841 = vmatpush3.msra.mxu0 %v320_v7  ;;  %1875 = vmatpush3.msra.mxu1 %v2429_v28 }
  0x5e   :  { %1842 = vmatprep.subr.mxu0 %v319_v11  ;;  %1876 = vmatprep.subr.mxu1 %v2205_v0 }
  0x5f   :  { %1843 = vmatpush3.msra.mxu0 %v319_v11  ;;  %1877 = vmatpush3.msra.mxu1 %v2438_v29  ;;  %v2491_v11 = vld [vmem:[%s2661_s8] sm:$0xff] }
  0x60   :  { %1845 = vmatmul.mubr.f32.vlgmr.msra.gmra.mxu0 %v308_v12  ;;  %1885 = vmatprep.subr.mxu0 %v2205_v0  ;;  %v814_v12 = vld [vmem:[#allocation6 + $0x78] sm:$0xff] }
  0x61   :  { %1847 = vmatprep.mubr.f32.mxu0 %v311_v14  ;;  %1886 = vmatpush3.msra.mxu0 %v2322_v16  ;;  %v812_v14 = vld [vmem:[#allocation6 + $0x68] sm:$0xff] }
  0x62   :  { %1887 = vmatprep.subr.mxu0 %v2205_v0  ;;  %1878 = vmatprep.subr.mxu1 %v2205_v0 }
  0x63   :  { %1888 = vmatpush3.msra.mxu0 %v2330_v17  ;;  %1879 = vmatpush3.msra.mxu1 %v2447_v30 }
  0x64   :  { %1848 = vmatmul.mubr.f32.gmra.mxu0 %v313_v15  ;;  %1889 = vmatprep.subr.mxu0 %v2205_v0  ;;  %v811_v15 = vld [vmem:[#allocation6 + $0x60] sm:$0xff] }
  0x65   :  { %1890 = vmatpush3.msra.mxu0 %v2336_v18  ;;  %1882 = vmatprep.mubr.msk.f32.mxu1 %vm2206_vm2, %v2205_v0 }
  0x66   :  { %1891 = vmatprep.subr.mxu0 %v2205_v0  ;;  %1880 = vmatprep.subr.mxu1 %v2205_v0 }
  0x67   :  { %1892 = vmatpush3.msra.mxu0 %v2349_v19  ;;  %1881 = vmatpush3.msra.mxu1 %v2453_v31 }
  0x68   :  { %1893 = vmatprep.subr.mxu0 %v2205_v0  ;;  %1917 = vmatprep.mubr.msk.f32.mxu0 %vm2206_vm2, %v2205_v0 }
  0x69   :  { %1894 = vmatpush3.msra.mxu0 %v2357_v20  ;;  %1920 = vmatprep.subr.mxu1 %v2205_v0 }
  0x6a   :  { %1895 = vmatprep.subr.mxu0 %v2205_v0 }
  0x6b   :  { %1896 = vmatpush3.msra.mxu0 %v2366_v21 }
  0x6c   :  { %1897 = vmatprep.subr.mxu0 %v2205_v0 }
  0x6d   :  { %1898 = vmatpush3.msra.mxu0 %v2375_v22 }
  0x6e   :  { %1899 = vmatprep.subr.mxu0 %v2205_v0 }
  0x6f   :  { %1900 = vmatpush3.msra.mxu0 %v2384_v23 }
  0x70   :  { %1901 = vmatprep.subr.mxu0 %v2205_v0 }
  0x71   :  { %1902 = vmatpush3.msra.mxu0 %v2393_v24 }
  0x72   :  { %1903 = vmatprep.subr.mxu0 %v2205_v0 }
  0x73   :  { %1904 = vmatpush3.msra.mxu0 %v2402_v25 }
  0x74   :  { %1905 = vmatprep.subr.mxu0 %v2205_v0 }
  0x75   :  { %1906 = vmatpush3.msra.mxu0 %v2411_v26 }
  0x76   :  { %1907 = vmatprep.subr.mxu0 %v2205_v0 }
  0x77   :  { %1908 = vmatpush3.msra.mxu0 %v2420_v27 }
  0x78   :  { %1909 = vmatprep.subr.mxu0 %v2205_v0 }
  0x79   :  { %1910 = vmatpush3.msra.mxu0 %v2429_v28 }
  0x7a   :  { %1911 = vmatprep.subr.mxu0 %v2205_v0 }
  0x7b   :  { %1912 = vmatpush3.msra.mxu0 %v2438_v29 }
  0x7c   :  { %1913 = vmatprep.subr.mxu0 %v2205_v0 }
  0x7d   :  { %1914 = vmatpush3.msra.mxu0 %v2447_v30 }
  0x7e   :  { %1915 = vmatprep.subr.mxu0 %v2205_v0 }
  0x7f   :  { %1916 = vmatpush3.msra.mxu0 %v2453_v31 }
  0x80   :  { %1968 = vmatprep.subr.mxu0 %v814_v12 }
  0xfe   :  { %v1770_v32 = vpop.f32.mrf.mxu0 }
  0xff   :  { %v1808_v33 = vpop.f32.mrf.mxu1 }
 0x100   :  { %v199_v34 = vpop.f32.mrf.mxu0  ;;  %v290_v40 = vadd.f32 %v1808_v33, %v1770_v32  ;;  %v810_v32 = vld [vmem:[#allocation6 + $0x58] sm:$0xff]  ;;  %v809_v33 = vld [vmem:[#allocation6 + $0x50] sm:$0xff] }
 0x101   :  { %v284_v36 = vpop.f32.mrf.mxu1 }
 0x102   :  { %v285_v41 = vadd.f32 %v284_v36, %v199_v34 }
 0x103   :  { %v1811_v37 = vpop.f32.mrf.mxu1 }
 0x104   :  { %v1773_v35 = vpop.f32.mrf.mxu0 }
 0x105   :  { %v294_v42 = vpop.f32.mrf.mxu1  ;;  %v300_v47 = vadd.f32 %v1811_v37, %v1773_v35 }
 0x106   :  { %v209_v38 = vpop.f32.mrf.mxu0 }
 0x107   :  { %v295_v48 = vadd.f32 %v294_v42, %v209_v38 }
 0x120   :  { %v1846_v39 = vpop.f32.mrf.mxu0 }
 0x121   :  { %v2466_v44 = vadd.f32 %v1846_v39, %v290_v40 }
 0x122   :  { %v401_v43 = vpop.f32.mrf.mxu0 }
 0x123   :  { %v2468_v45 = vadd.f32 %v401_v43, %v285_v41  ;;  %v434_v51 = vmul.f32 %v2466_v44, %v2466_v44  ;;  %v606_v43 = vld [vmem:[%s2656_s3] sm:$0x1] }
 0x124   :  { %v1849_v46 = vpop.f32.mrf.mxu0 }
 0x125   :  { %v433_v49 = vmul.f32 %v2468_v45, %v2468_v45  ;;  %v424_v52 = vadd.f32 %v2466_v44, %v2468_v45  ;;  %v2476_v53 = vadd.f32 %v1849_v46, %v300_v47 }
 0x126   :  { %v411_v50 = vpop.f32.mrf.mxu0 }
 0x127   :  { %v2478_v54 = vadd.f32 %v411_v50, %v295_v48  ;;  %v437_v55 = vadd.f32 %v434_v51, %v433_v49  ;;  %v436_v58 = vmul.f32 %v2476_v53, %v2476_v53  ;;  %v610_v48 = vld [vmem:[%s2657_s4] sm:$0x1]  ;;  %v851_v49 = vld [vmem:[#allocation6 + $0xf8] sm:$0xff] }
 0x129   :  { %v425_v56 = vadd.f32 %v424_v52, %v2478_v54  ;;  %v435_v57 = vmul.f32 %v2478_v54, %v2478_v54  ;;  %v850_v52 = vld [vmem:[#allocation6 + $0xf0] sm:$0xff] }
 0x12b   :  { %v426_v59 = vadd.f32 %v425_v56, %v2476_v53  ;;  %v438_v60 = vadd.f32 %v437_v55, %v435_v57  ;;  %v849_v55 = vld [vmem:[#allocation6 + $0xe8] sm:$0xff]  ;;  %v848_v56 = vld [vmem:[#allocation6 + $0xe0] sm:$0xff]  ;;  %v847_v57 = vld [vmem:[#allocation6 + $0xd8] sm:$0xff] }
 0x12d   :  { %v427_v61 = vrot.slane %v426_v59, 4  ;;  %v439_v62 = vadd.f32 %v438_v60, %v436_v58  ;;  %v846_v58 = vld [vmem:[#allocation6 + $0xd0] sm:$0xff]  ;;  %v845_v60 = vld [vmem:[#allocation6 + $0xc8] sm:$0xff] }
 0x12f   :  { %v428_v63 = vadd.f32 %v427_v61, %v426_v59  ;;  %v440_v1 = vrot.slane %v439_v62, 4  ;;  %v808_v59 = vld [vmem:[#allocation6 + $0x48] sm:$0xff]  ;;  %v807_v61 = vld [vmem:[#allocation6 + $0x40] sm:$0xff] }
 0x131   :  { %v429_v2 = vrot.slane %v428_v63, 2  ;;  %v441_v3 = vadd.f32 %v440_v1, %v439_v62  ;;  %v844_v62 = vld [vmem:[#allocation6 + $0xc0] sm:$0xff]  ;;  %v843_v1 = vld [vmem:[#allocation6 + $0xb8] sm:$0xff] }
 0x133   :  { %v430_v4 = vadd.f32 %v429_v2, %v428_v63  ;;  %v442_v5 = vrot.slane %v441_v3, 2  ;;  %v806_v63 = vld [vmem:[#allocation6 + $0x38] sm:$0xff]  ;;  %v805_v2 = vld [vmem:[#allocation6 + $0x30] sm:$0xff] }
 0x135   :  { %v431_v6 = vrot.slane %v430_v4, 1  ;;  %v443_v7 = vadd.f32 %v442_v5, %v441_v3  ;;  %v842_v3 = vld [vmem:[#allocation6 + $0xb0] sm:$0xff]  ;;  %v841_v5 = vld [vmem:[#allocation6 + $0xa8] sm:$0xff] }
 0x137   :  { %v432_v8 = vadd.f32 %v431_v6, %v430_v4  ;;  %v444_v9 = vrot.slane %v443_v7, 1  ;;  %v804_v4 = vld [vmem:[#allocation6 + $0x28] sm:$0xff]  ;;  %v803_v6 = vld [vmem:[#allocation6 + $0x20] sm:$0xff] }
 0x139   :  { %1883 = vmatmul.mubr.f32.vlgmr.msra.gmra.mxu1 %v432_v8  ;;  %v445_v10 = vadd.f32 %v444_v9, %v443_v7  ;;  %v840_v7 = vld [vmem:[#allocation6 + $0xa0] sm:$0xff]  ;;  %v802_v8 = vld [vmem:[#allocation6 + $0x18] sm:$0xff] }
 0x13a   :  { %1922 = vmatprep.mubr.msk.f32.mxu1 %vm2206_vm2, %v2205_v0  ;;  %1921 = vmatpush3.msra.mxu1 %v2491_v11  ;;  %v839_v9 = vld [vmem:[#allocation6 + $0x98] sm:$0xff] }
 0x13b   :  { %1918 = vmatmul.mubr.f32.vlgmr.msra.gmra.mxu0 %v445_v10  ;;  %1925 = vmatprep.subr.mxu1 %v2205_v0  ;;  %v801_v10 = vld [vmem:[#allocation6 + $0x10] sm:$0xff] }
 0x13c   :  { %1969 = vmatpush3.msra.mxu0 %v814_v12  ;;  %v838_v12 = vld [vmem:[#allocation6 + $0x90] sm:$0xff] }
 0x13d   :  { %1970 = vmatprep.subr.mxu0 %v813_v13 }
 0x13e   :  { %1971 = vmatpush3.msra.mxu0 %v813_v13  ;;  %v800_v13 = vld [vmem:[#allocation6 + $0x8] sm:$0xff] }
 0x13f   :  { %1972 = vmatprep.subr.mxu0 %v812_v14 }
 0x140   :  { %1973 = vmatpush3.msra.mxu0 %v812_v14  ;;  %v837_v14 = vld [vmem:[#allocation6 + $0x88] sm:$0xff] }
 0x141   :  { %1974 = vmatprep.subr.mxu0 %v811_v15 }
 0x142   :  { %1975 = vmatpush3.msra.mxu0 %v811_v15  ;;  %v799_v15 = vld [vmem:[#allocation6] sm:$0xff] }
 0x143   :  { %1976 = vmatprep.subr.mxu0 %v810_v32 }
 0x144   :  { %1977 = vmatpush3.msra.mxu0 %v810_v32  ;;  %v836_v32 = vld [vmem:[#allocation6 + $0x80] sm:$0xff] }
 0x145   :  { %1978 = vmatprep.subr.mxu0 %v809_v33 }
 0x146   :  { %1979 = vmatpush3.msra.mxu0 %v809_v33  ;;  %v1052_v33 = vld [vmem:[#allocation6 + $0x178] sm:$0xff] }
 0x147   :  { %1980 = vmatprep.subr.mxu0 %v808_v59 }
 0x148   :  { %1981 = vmatpush3.msra.mxu0 %v808_v59 }
 0x149   :  { %1982 = vmatprep.subr.mxu0 %v807_v61 }
 0x14a   :  { %1983 = vmatpush3.msra.mxu0 %v807_v61 }
 0x14b   :  { %1984 = vmatprep.subr.mxu0 %v806_v63 }
 0x14c   :  { %1985 = vmatpush3.msra.mxu0 %v806_v63 }
 0x14d   :  { %1986 = vmatprep.subr.mxu0 %v805_v2 }
 0x14e   :  { %1987 = vmatpush3.msra.mxu0 %v805_v2 }
 0x14f   :  { %1988 = vmatprep.subr.mxu0 %v804_v4 }
 0x150   :  { %1989 = vmatpush3.msra.mxu0 %v804_v4 }
 0x151   :  { %1990 = vmatprep.subr.mxu0 %v803_v6 }
 0x152   :  { %1991 = vmatpush3.msra.mxu0 %v803_v6 }
 0x153   :  { %1992 = vmatprep.subr.mxu0 %v802_v8 }
 0x154   :  { %1993 = vmatpush3.msra.mxu0 %v802_v8 }
 0x155   :  { %1994 = vmatprep.subr.mxu0 %v801_v10 }
 0x156   :  { %1995 = vmatpush3.msra.mxu0 %v801_v10 }
 0x157   :  { %1996 = vmatprep.subr.mxu0 %v800_v13 }
 0x158   :  { %1997 = vmatpush3.msra.mxu0 %v800_v13 }
 0x159   :  { %1998 = vmatprep.subr.mxu0 %v799_v15 }
 0x15a   :  { %1999 = vmatpush3.msra.mxu0 %v799_v15  ;;  %v1050_v15 = vld [vmem:[#allocation6 + $0x168] sm:$0xff] }
 0x15b   :  { %2044 = vmatprep.subr.mxu0 %v2205_v0 }
 0x1f9   :  { %v528_v34 = vpop.f32.mrf.mxu1 }
 0x1fa   :  { %v602_v35 = vmul.f32 0.001953125, %v528_v34  ;;  %v761_v34 = vlaneseq }
 0x1fb   :  { %v1884_v36 = vpop.f32.mrf.mxu1  ;;  %v598_v37 = vpop.f32.mrf.mxu0 }
 0x1fc   :  { %v604_v38 = vmul.f32 %v602_v35, %v602_v35  ;;  %v603_v39 = vmul.f32 0.001953125, %v598_v37 }
 0x1fd   :  { %v1919_v40 = vpop.f32.mrf.mxu0 }
 0x1fe   :  { %v605_v41 = vsub.f32 %v603_v39, %v604_v38 }
 0x200   :  { %v607_v42 = vadd.f32 1e-05, %v605_v41 }
 0x202   :  { %2131 = vrsqrt.f32 %v607_v42 }
 0x20f   :  { %v2132_v46 = vpop.eup %2131 }
 0x210   :  { %v609_v47 = vmul.f32 %v2132_v46, %v606_v43 }
 0x212   :  { %1923 = vmatmul.mubr.msk.f32.vlgmr.msra.gmra.mxu1 %vm614_vm3, %v609_v47  ;;  %v611_v50 = vmul.f32 %v609_v47, %v602_v35  ;;  %v762_v35 = vshrl.u32 %v761_v34, 7  ;;  %v1049_v34 = vld [vmem:[#allocation6 + $0x160] sm:$0xff] }
 0x213   :  { %1926 = vmatpush3.msra.mxu1 %v2491_v11  ;;  %1927 = vmatprep.mubr.msk.f32.mxu1 %vm2206_vm2, %v2205_v0 }
 0x214   :  { %v612_v51 = vsub.f32 %v610_v48, %v611_v50  ;;  %1930 = vmatprep.subr.mxu1 %v851_v49  ;;  %v2507_v36 = vsub.s32 0, %v762_v35 }
 0x216   :  { %1928 = vmatmul.mubr.msk.f32.vlgmr.msra.gmra.mxu1 %vm614_vm3, %v612_v51 }
 0x217   :  { %1931 = vmatpush3.msra.mxu1 %v851_v49 }
 0x218   :  { %1932 = vmatprep.subr.mxu1 %v850_v52 }
 0x219   :  { %1933 = vmatpush3.msra.mxu1 %v850_v52 }
 0x21a   :  { %1934 = vmatprep.subr.mxu1 %v849_v55 }
 0x21b   :  { %1935 = vmatpush3.msra.mxu1 %v849_v55 }
 0x21c   :  { %1936 = vmatprep.subr.mxu1 %v848_v56 }
 0x21d   :  { %1937 = vmatpush3.msra.mxu1 %v848_v56 }
 0x21e   :  { %1938 = vmatprep.subr.mxu1 %v847_v57 }
 0x21f   :  { %1939 = vmatpush3.msra.mxu1 %v847_v57 }
 0x220   :  { %1940 = vmatprep.subr.mxu1 %v846_v58 }
 0x221   :  { %1941 = vmatpush3.msra.mxu1 %v846_v58 }
 0x222   :  { %1942 = vmatprep.subr.mxu1 %v845_v60 }
 0x223   :  { %1943 = vmatpush3.msra.mxu1 %v845_v60 }
 0x224   :  { %1944 = vmatprep.subr.mxu1 %v844_v62 }
 0x225   :  { %1945 = vmatpush3.msra.mxu1 %v844_v62 }
 0x226   :  { %1946 = vmatprep.subr.mxu1 %v843_v1 }
 0x227   :  { %1947 = vmatpush3.msra.mxu1 %v843_v1 }
 0x228   :  { %1948 = vmatprep.subr.mxu1 %v842_v3 }
 0x229   :  { %1949 = vmatpush3.msra.mxu1 %v842_v3 }
 0x22a   :  { %1950 = vmatprep.subr.mxu1 %v841_v5 }
 0x22b   :  { %1951 = vmatpush3.msra.mxu1 %v841_v5 }
 0x22c   :  { %1952 = vmatprep.subr.mxu1 %v840_v7 }
 0x22d   :  { %1953 = vmatpush3.msra.mxu1 %v840_v7 }
 0x22e   :  { %1954 = vmatprep.subr.mxu1 %v839_v9 }
 0x22f   :  { %1955 = vmatpush3.msra.mxu1 %v839_v9  ;;  %v1051_v9 = vld [vmem:[#allocation6 + $0x170] sm:$0xff] }
 0x230   :  { %1956 = vmatprep.subr.mxu1 %v838_v12 }
 0x231   :  { %1957 = vmatpush3.msra.mxu1 %v838_v12 }
 0x232   :  { %1958 = vmatprep.subr.mxu1 %v837_v14 }
 0x233   :  { %1959 = vmatpush3.msra.mxu1 %v837_v14 }
 0x234   :  { %1960 = vmatprep.subr.mxu1 %v836_v32 }
 0x235   :  { %1961 = vmatpush3.msra.mxu1 %v836_v32 }
 0x236   :  { %2006 = vmatprep.subr.mxu1 %v1052_v33 }
 0x2d2   :  { %v684_v37 = vpop.f32.mrf.mxu1 }
 0x2d3   :  { %v764_v38 = vrot.slane %v684_v37, %v2507_v36  ;;  %v1047_v37 = vld [vmem:[#allocation6 + $0x150] sm:$0xff] }
 0x2d4   :  { %v1924_v39 = vpop.f32.mrf.mxu1 }
 0x2d5   :  { %v765_v40 = vmul.f32 %v764_v38, %v2468_v45  ;;  %v766_v42 = vmul.f32 %v764_v38, %v2466_v44  ;;  %v767_v43 = vmul.f32 %v764_v38, %v2478_v54  ;;  %v768_v46 = vmul.f32 %v764_v38, %v2476_v53  ;;  %v1046_v38 = vld [vmem:[#allocation6 + $0x148] sm:$0xff]  ;;  %v1045_v39 = vld [vmem:[#allocation6 + $0x140] sm:$0xff] }
 0x2d6   :  { %v757_v41 = vpop.f32.mrf.mxu1 }
 0x2d7   :  { %v772_v47 = vrot.slane %v757_v41, %v2507_v36  ;;  %v1043_v41 = vld [vmem:[#allocation6 + $0x130] sm:$0xff] }
 0x2d8   :  { %v1929_v48 = vpop.f32.mrf.mxu1 }
 0x2d9   :  { %v773_v49 = vadd.f32 %v772_v47, %v765_v40  ;;  %v774_v50 = vadd.f32 %v772_v47, %v766_v42  ;;  %v775_v51 = vadd.f32 %v772_v47, %v767_v43  ;;  %v776_v52 = vadd.f32 %v772_v47, %v768_v46  ;;  %v1044_v40 = vld [vmem:[#allocation6 + $0x138] sm:$0xff]  ;;  %v1042_v42 = vld [vmem:[#allocation6 + $0x128] sm:$0xff]  ;;  %v1041_v43 = vld [vmem:[#allocation6 + $0x120] sm:$0xff] }
 0x2da   :  { %v1040_v46 = vld [vmem:[#allocation6 + $0x118] sm:$0xff]  ;;  %v1039_v47 = vld [vmem:[#allocation6 + $0x110] sm:$0xff]  ;;  %v1038_v48 = vld [vmem:[#allocation6 + $0x108] sm:$0xff] }
 0x2db   :  { %vm777_vm4 = vcmp.ge.f32.partialorder %v773_v49, 0.0  ;;  %vm778_vm5 = vcmp.ge.f32.partialorder %v774_v50, 0.0  ;;  %vm779_vm6 = vcmp.ge.f32.partialorder %v775_v51, 0.0  ;;  %vm780_vm7 = vcmp.ge.f32.partialorder %v776_v52, 0.0 }
 0x2dc   :  { %v781_v55 = vmul.f32 0.01, %v773_v49  ;;  %v782_v45 = vmul.f32 0.01, %v774_v50  ;;  %v783_v56 = vmul.f32 0.01, %v775_v51 }
 0x2dd   :  { %v784_v57 = vmul.f32 0.01, %v776_v52 }
 0x2de   :  { %v785_v44 = vsel %vm777_vm4, %v773_v49, %v781_v55  ;;  %v786_v58 = vsel %vm778_vm5, %v774_v50, %v782_v45  ;;  %v787_v54 = vsel %vm779_vm6, %v775_v51, %v783_v56  ;;  %v1037_v50 = vld [vmem:[#allocation6 + $0x100] sm:$0xff] }
 0x2df   :  { %v788_v59 = vsel %vm780_vm7, %v776_v52, %v784_v57  ;;  %789 = vst [vmem:[#allocation2 + $0x1] sm:$0xff] %v785_v44  ;;  %790 = vst [vmem:[#allocation2 + $0x9] sm:$0xff] %v786_v58 }
 0x2e0   :  { %791 = vst [vmem:[#allocation2 + $0x19] sm:$0xff] %v787_v54  ;;  %792 = vst [vmem:[#allocation2 + $0x21] sm:$0xff] %v788_v59 }
 0x2e6   :  { %v793_v53 = vld [vmem:[#allocation2] sm:$0xff]  ;;  %v2515_v60 = vld [vmem:[#allocation2 + $0x8] sm:$0xff]  ;;  %v2520_v1 = vld [vmem:[#allocation2 + $0x10] sm:$0x3] }
 0x2e7   :  { %v2517_v61 = vld [vmem:[#allocation2 + $0x18] sm:$0xff]  ;;  %v821_v62 = vrot.slane %v793_v53, 1  ;;  %2000 = vmatprep.mubr.f32.mxu0 %v793_v53  ;;  %v822_v63 = vrot.slane %v2515_v60, 1  ;;  %v824_v3 = vrot.slane %v2520_v1, 1  ;;  %v2525_v4 = vld [vmem:[#allocation2 + $0x20] sm:$0xff]  ;;  %v1022_v12 = vrot.slane %v793_v53, 2 }
 0x2e8   :  { %2001 = vmatmul.mubr.f32.vlgmr.msra.gmra.mxu0 %v2515_v60  ;;  %v826_v2 = vrot.slane %v2517_v61, 1  ;;  %v827_v6 = vrot.slane %v2525_v4, 1  ;;  %v2530_v7 = vld [vmem:[#allocation2 + $0x28] sm:$0x3]  ;;  %v1023_v13 = vrot.slane %v2515_v60, 2  ;;  %v1025_v49 = vrot.slane %v2520_v1, 2 }
 0x2e9   :  { %2003 = vmatprep.mubr.f32.mxu0 %v2517_v61  ;;  %v823_v5 = vsel %vm101_vm0, %v821_v62, %v822_v63  ;;  %2045 = vmatpush3.msra.mxu0 %v2322_v16  ;;  %v825_v8 = vsel %vm101_vm0, %v822_v63, %v824_v3  ;;  %v829_v10 = vrot.slane %v2530_v7, 1  ;;  %v1027_v51 = vrot.slane %v2517_v61, 2 }
 0x2ea   :  { %1962 = vmatprep.mubr.f32.mxu1 %v823_v5  ;;  %2046 = vmatprep.subr.mxu0 %v2205_v0  ;;  %v828_v14 = vsel %vm101_vm0, %v826_v2, %v827_v6  ;;  %v1024_v35 = vsel %vm303_vm1, %v1022_v12, %v1023_v13  ;;  %v1028_v52 = vrot.slane %v2525_v4, 2  ;;  %v1026_v55 = vsel %vm303_vm1, %v1023_v13, %v1025_v49 }
 0x2eb   :  { %1963 = vmatmul.mubr.f32.vlgmr.msra.gmra.mxu1 %v825_v8  ;;  %2047 = vmatpush3.msra.mxu0 %v2330_v17  ;;  %v830_v32 = vsel %vm101_vm0, %v827_v6, %v829_v10  ;;  %v1030_v45 = vrot.slane %v2530_v7, 2 }
 0x2ec   :  { %2007 = vmatpush3.msra.mxu1 %v1052_v33  ;;  %1965 = vmatprep.mubr.f32.mxu1 %v828_v14  ;;  %v1048_v33 = vld [vmem:[#allocation6 + $0x158] sm:$0xff]  ;;  %v1029_v56 = vsel %vm303_vm1, %v1027_v51, %v1028_v52 }
 0x2ed   :  { %2004 = vmatmul.mubr.f32.gmra.mxu0 %v2525_v4  ;;  %2008 = vmatprep.subr.mxu1 %v1051_v9  ;;  %v1031_v57 = vsel %vm303_vm1, %v1028_v52, %v1030_v45 }
 0x2ee   :  { %2009 = vmatpush3.msra.mxu1 %v1051_v9  ;;  %2048 = vmatprep.subr.mxu0 %v2205_v0 }
 0x2ef   :  { %2010 = vmatprep.subr.mxu1 %v1050_v15  ;;  %1966 = vmatmul.mubr.f32.gmra.mxu1 %v830_v32 }
 0x2f0   :  { %2011 = vmatpush3.msra.mxu1 %v1050_v15  ;;  %2038 = vmatprep.mubr.f32.mxu1 %v1024_v35 }
 0x2f1   :  { %2012 = vmatprep.subr.mxu1 %v1049_v34  ;;  %2049 = vmatpush3.msra.mxu0 %v2336_v18 }
 0x2f2   :  { %2013 = vmatpush3.msra.mxu1 %v1049_v34  ;;  %2050 = vmatprep.subr.mxu0 %v2205_v0 }
 0x2f3   :  { %2014 = vmatprep.subr.mxu1 %v1048_v33  ;;  %2051 = vmatpush3.msra.mxu0 %v2349_v19 }
 0x2f4   :  { %2015 = vmatpush3.msra.mxu1 %v1048_v33  ;;  %2052 = vmatprep.subr.mxu0 %v2205_v0 }
 0x2f5   :  { %2016 = vmatprep.subr.mxu1 %v1047_v37  ;;  %2053 = vmatpush3.msra.mxu0 %v2357_v20 }
 0x2f6   :  { %2017 = vmatpush3.msra.mxu1 %v1047_v37  ;;  %2054 = vmatprep.subr.mxu0 %v2205_v0 }
 0x2f7   :  { %2018 = vmatprep.subr.mxu1 %v1046_v38  ;;  %2055 = vmatpush3.msra.mxu0 %v2366_v21 }
 0x2f8   :  { %2019 = vmatpush3.msra.mxu1 %v1046_v38  ;;  %2056 = vmatprep.subr.mxu0 %v2205_v0 }
 0x2f9   :  { %2020 = vmatprep.subr.mxu1 %v1045_v39  ;;  %2057 = vmatpush3.msra.mxu0 %v2375_v22 }
 0x2fa   :  { %2021 = vmatpush3.msra.mxu1 %v1045_v39  ;;  %2058 = vmatprep.subr.mxu0 %v2205_v0 }
 0x2fb   :  { %2022 = vmatprep.subr.mxu1 %v1044_v40  ;;  %2059 = vmatpush3.msra.mxu0 %v2384_v23 }
 0x2fc   :  { %2023 = vmatpush3.msra.mxu1 %v1044_v40  ;;  %2060 = vmatprep.subr.mxu0 %v2205_v0 }
 0x2fd   :  { %2024 = vmatprep.subr.mxu1 %v1043_v41  ;;  %2061 = vmatpush3.msra.mxu0 %v2393_v24 }
 0x2fe   :  { %2025 = vmatpush3.msra.mxu1 %v1043_v41  ;;  %2062 = vmatprep.subr.mxu0 %v2205_v0 }
 0x2ff   :  { %2026 = vmatprep.subr.mxu1 %v1042_v42  ;;  %2063 = vmatpush3.msra.mxu0 %v2402_v25 }
 0x300   :  { %2027 = vmatpush3.msra.mxu1 %v1042_v42  ;;  %2064 = vmatprep.subr.mxu0 %v2205_v0 }
 0x301   :  { %2028 = vmatprep.subr.mxu1 %v1041_v43  ;;  %2065 = vmatpush3.msra.mxu0 %v2411_v26 }
 0x302   :  { %2029 = vmatpush3.msra.mxu1 %v1041_v43  ;;  %2066 = vmatprep.subr.mxu0 %v2205_v0 }
 0x303   :  { %2030 = vmatprep.subr.mxu1 %v1040_v46  ;;  %2067 = vmatpush3.msra.mxu0 %v2420_v27 }
 0x304   :  { %2031 = vmatpush3.msra.mxu1 %v1040_v46  ;;  %2068 = vmatprep.subr.mxu0 %v2205_v0 }
 0x305   :  { %2032 = vmatprep.subr.mxu1 %v1039_v47  ;;  %2069 = vmatpush3.msra.mxu0 %v2429_v28 }
 0x306   :  { %2033 = vmatpush3.msra.mxu1 %v1039_v47  ;;  %2070 = vmatprep.subr.mxu0 %v2205_v0  ;;  %v1324_v47 = vld [vmem:[%s2658_s5] sm:$0x1] }
 0x307   :  { %2034 = vmatprep.subr.mxu1 %v1038_v48  ;;  %2071 = vmatpush3.msra.mxu0 %v2438_v29 }
 0x308   :  { %2035 = vmatpush3.msra.mxu1 %v1038_v48  ;;  %2072 = vmatprep.subr.mxu0 %v2205_v0 }
 0x309   :  { %2036 = vmatprep.subr.mxu1 %v1037_v50  ;;  %2073 = vmatpush3.msra.mxu0 %v2447_v30 }
 0x30a   :  { %2037 = vmatpush3.msra.mxu1 %v1037_v50  ;;  %2074 = vmatprep.subr.mxu0 %v2205_v0  ;;  %v1328_v50 = vld [vmem:[%s2659_s6] sm:$0x1] }
 0x30b   :  { %2039 = vmatmul.mubr.f32.vlgmr.msra.gmra.mxu1 %v1026_v55  ;;  %2079 = vmatprep.subr.mxu1 %v2205_v0 }
 0x30c   :  { %2041 = vmatprep.mubr.f32.mxu1 %v1029_v56  ;;  %2080 = vmatpush3.msra.mxu1 %v2322_v16 }
 0x30d   :  { %2081 = vmatprep.subr.mxu1 %v2205_v0  ;;  %2075 = vmatpush3.msra.mxu0 %v2453_v31 }
 0x30e   :  { %2082 = vmatpush3.msra.mxu1 %v2330_v17  ;;  %2076 = vmatprep.mubr.msk.f32.mxu0 %vm2206_vm2, %v2205_v0 }
 0x30f   :  { %2042 = vmatmul.mubr.f32.gmra.mxu1 %v1031_v57  ;;  %2083 = vmatprep.subr.mxu1 %v2205_v0 }
 0x310   :  { %2084 = vmatpush3.msra.mxu1 %v2336_v18  ;;  %2111 = vmatprep.mubr.msk.f32.mxu1 %vm2206_vm2, %v2205_v0 }
 0x311   :  { %2085 = vmatprep.subr.mxu1 %v2205_v0  ;;  %2114 = vmatprep.subr.mxu0 %v2205_v0 }
 0x312   :  { %2086 = vmatpush3.msra.mxu1 %v2349_v19 }
 0x313   :  { %2087 = vmatprep.subr.mxu1 %v2205_v0 }
 0x314   :  { %2088 = vmatpush3.msra.mxu1 %v2357_v20 }
 0x315   :  { %2089 = vmatprep.subr.mxu1 %v2205_v0 }
 0x316   :  { %2090 = vmatpush3.msra.mxu1 %v2366_v21 }
 0x317   :  { %2091 = vmatprep.subr.mxu1 %v2205_v0 }
 0x318   :  { %2092 = vmatpush3.msra.mxu1 %v2375_v22 }
 0x319   :  { %2093 = vmatprep.subr.mxu1 %v2205_v0 }
 0x31a   :  { %2094 = vmatpush3.msra.mxu1 %v2384_v23 }
 0x31b   :  { %2095 = vmatprep.subr.mxu1 %v2205_v0 }
 0x31c   :  { %2096 = vmatpush3.msra.mxu1 %v2393_v24 }
 0x31d   :  { %2097 = vmatprep.subr.mxu1 %v2205_v0 }
 0x31e   :  { %2098 = vmatpush3.msra.mxu1 %v2402_v25 }
 0x31f   :  { %2099 = vmatprep.subr.mxu1 %v2205_v0 }
 0x320   :  { %2100 = vmatpush3.msra.mxu1 %v2411_v26 }
 0x321   :  { %2101 = vmatprep.subr.mxu1 %v2205_v0 }
 0x322   :  { %2102 = vmatpush3.msra.mxu1 %v2420_v27 }
 0x323   :  { %2103 = vmatprep.subr.mxu1 %v2205_v0 }
 0x324   :  { %2104 = vmatpush3.msra.mxu1 %v2429_v28 }
 0x325   :  { %2105 = vmatprep.subr.mxu1 %v2205_v0 }
 0x326   :  { %2106 = vmatpush3.msra.mxu1 %v2438_v29 }
 0x327   :  { %2107 = vmatprep.subr.mxu1 %v2205_v0 }
 0x328   :  { %2108 = vmatpush3.msra.mxu1 %v2447_v30 }
 0x329   :  { %2109 = vmatprep.subr.mxu1 %v2205_v0 }
 0x32a   :  { %2110 = vmatpush3.msra.mxu1 %v2453_v31 }
 0x3a8   :  { %v2002_v18 = vpop.f32.mrf.mxu0 }
 0x3aa   :  { %v1003_v20 = vpop.f32.mrf.mxu0 }
 0x3ab   :  { %v1964_v16 = vpop.f32.mrf.mxu1 }
 0x3ac   :  { %v1009_v24 = vadd.f32 %v2002_v18, %v1964_v16 }
 0x3ad   :  { %v918_v17 = vpop.f32.mrf.mxu1  ;;  %v2005_v22 = vpop.f32.mrf.mxu0 }
 0x3ae   :  { %v1004_v25 = vadd.f32 %v1003_v20, %v918_v17 }
 0x3af   :  { %v1967_v19 = vpop.f32.mrf.mxu1  ;;  %v1013_v29 = vpop.f32.mrf.mxu0 }
 0x3b0   :  { %v1019_v30 = vadd.f32 %v2005_v22, %v1967_v19  ;;  %v1497_v22 = vld [vmem:[%s2653_s0 + $0x18] sm:$0xff] }
 0x3b1   :  { %v928_v21 = vpop.f32.mrf.mxu1 }
 0x3b2   :  { %v1014_v58 = vadd.f32 %v1013_v29, %v928_v21  ;;  %v1496_v21 = vld [vmem:[%s2653_s0 + $0x10] sm:$0xff] }
 0x3cb   :  { %v2040_v23 = vpop.f32.mrf.mxu1 }
 0x3cc   :  { %v1139_v27 = vadd.f32 %v2040_v23, %v1009_v24 }
 0x3cd   :  { %v1119_v26 = vpop.f32.mrf.mxu1 }
 0x3ce   :  { %v1138_v28 = vadd.f32 %v1119_v26, %v1004_v25  ;;  %v1152_v31 = vmul.f32 %v1139_v27, %v1139_v27 }
 0x3cf   :  { %v2043_v44 = vpop.f32.mrf.mxu1 }
 0x3d0   :  { %v1151_v54 = vmul.f32 %v1138_v28, %v1138_v28  ;;  %v1142_v53 = vadd.f32 %v1139_v27, %v1138_v28  ;;  %v1141_v60 = vadd.f32 %v2043_v44, %v1019_v30 }
 0x3d1   :  { %v1129_v59 = vpop.f32.mrf.mxu1 }
 0x3d2   :  { %v1140_v61 = vadd.f32 %v1129_v59, %v1014_v58  ;;  %v1155_v62 = vadd.f32 %v1152_v31, %v1151_v54  ;;  %v1154_v2 = vmul.f32 %v1141_v60, %v1141_v60 }
 0x3d4   :  { %v1143_v63 = vadd.f32 %v1142_v53, %v1140_v61  ;;  %v1153_v1 = vmul.f32 %v1140_v61, %v1140_v61 }
 0x3d6   :  { %v1144_v3 = vadd.f32 %v1143_v63, %v1141_v60  ;;  %v1156_v4 = vadd.f32 %v1155_v62, %v1153_v1 }
 0x3d8   :  { %v1145_v5 = vrot.slane %v1144_v3, 4  ;;  %v1157_v6 = vadd.f32 %v1156_v4, %v1154_v2 }
 0x3da   :  { %v1146_v7 = vadd.f32 %v1145_v5, %v1144_v3  ;;  %v1158_v8 = vrot.slane %v1157_v6, 4 }
 0x3dc   :  { %v1147_v9 = vrot.slane %v1146_v7, 2  ;;  %v1159_v10 = vadd.f32 %v1158_v8, %v1157_v6 }
 0x3de   :  { %v1148_v12 = vadd.f32 %v1147_v9, %v1146_v7  ;;  %v1160_v13 = vrot.slane %v1159_v10, 2 }
 0x3e0   :  { %v1149_v14 = vrot.slane %v1148_v12, 1  ;;  %v1161_v15 = vadd.f32 %v1160_v13, %v1159_v10 }
 0x3e2   :  { %v1150_v32 = vadd.f32 %v1149_v14, %v1148_v12  ;;  %v1162_v34 = vrot.slane %v1161_v15, 1 }
 0x3e4   :  { %2077 = vmatmul.mubr.f32.vlgmr.msra.gmra.mxu0 %v1150_v32  ;;  %v1163_v35 = vadd.f32 %v1162_v34, %v1161_v15 }
 0x3e5   :  { %2115 = vmatpush3.msra.mxu0 %v2491_v11  ;;  %2116 = vmatprep.mubr.msk.f32.mxu0 %vm2206_vm2, %v2205_v0 }
 0x3e6   :  { %2112 = vmatmul.mubr.f32.vlgmr.msra.gmra.mxu1 %v1163_v35  ;;  %2119 = vmatprep.subr.mxu0 %v2205_v0 }
 0x4a4   :  { %v1246_v33 = vpop.f32.mrf.mxu0 }
 0x4a5   :  { %v1320_v37 = vmul.f32 0.001953125, %v1246_v33 }
 0x4a6   :  { %v2078_v38 = vpop.f32.mrf.mxu0  ;;  %v1316_v39 = vpop.f32.mrf.mxu1 }
 0x4a7   :  { %v1322_v40 = vmul.f32 %v1320_v37, %v1320_v37  ;;  %v1321_v41 = vmul.f32 0.001953125, %v1316_v39 }
 0x4a8   :  { %v2113_v42 = vpop.f32.mrf.mxu1 }
 0x4a9   :  { %v1323_v43 = vsub.f32 %v1321_v41, %v1322_v40 }
 0x4ab   :  { %v1325_v46 = vadd.f32 1e-05, %v1323_v43 }
 0x4ad   :  { %2133 = vrsqrt.f32 %v1325_v46 }
 0x4ba   :  { %v2134_v48 = vpop.eup %2133 }
 0x4bb   :  { %v1327_v49 = vmul.f32 %v2134_v48, %v1324_v47 }
 0x4bd   :  { %2117 = vmatmul.mubr.msk.f32.vlgmr.msra.gmra.mxu0 %vm614_vm3, %v1327_v49  ;;  %v1329_v51 = vmul.f32 %v1327_v49, %v1320_v37 }
 0x4be   :  { %2120 = vmatpush3.msra.mxu0 %v2491_v11  ;;  %2121 = vmatprep.mubr.msk.f32.mxu0 %vm2206_vm2, %v2205_v0  ;;  %v1494_v11 = vld [vmem:[%s2653_s0] sm:$0xff]  ;;  %v1495_v0 = vld [vmem:[%s2653_s0 + $0x8] sm:$0xff]  ;;  %s2175_s0 = scalar_lea.vmem %s1524_s30, 512 }
 0x4bf   :  { %v1330_v52 = vsub.f32 %v1328_v50, %v1329_v51  ;;  %p2176_p10 = scmp.ne.s32.totalorder %s1524_s30, %s2175_s0  ;;  %p2181_p12 = scmp.lt.s32.totalorder %s2175_s0, %s2175_s0 }
 0x4c1   :  { %2122 = vmatmul.mubr.msk.f32.vlgmr.msra.gmra.mxu0 %vm614_vm3, %v1330_v52  ;;  %p2182_p13 = por %p2181_p12, %p2180_p11 }
 0x4c3   :  { %p2183_p0 = pnand %p2182_p13, %p2176_p10 }
 0x57d   :  { %v1401_v55 = vpop.f32.mrf.mxu0 }
 0x57e   :  { %v1481_v45 = vrot.slane %v1401_v55, %v2507_v36 }
 0x57f   :  { %v2118_v56 = vpop.f32.mrf.mxu0 }
 0x580   :  { %v1482_v57 = vmul.f32 %v1481_v45, %v1138_v28  ;;  %v1483_v17 = vmul.f32 %v1481_v45, %v1139_v27  ;;  %v1484_v18 = vmul.f32 %v1481_v45, %v1140_v61  ;;  %v1485_v19 = vmul.f32 %v1481_v45, %v1141_v60 }
 0x581   :  { %v1474_v16 = vpop.f32.mrf.mxu0 }
 0x582   :  { %v1489_v20 = vrot.slane %v1474_v16, %v2507_v36 }
 0x583   :  { %v2123_v23 = vpop.f32.mrf.mxu0 }
 0x584   :  { %v1490_v24 = vadd.f32 %v1489_v20, %v1482_v57  ;;  %v1491_v25 = vadd.f32 %v1489_v20, %v1483_v17  ;;  %v1492_v36 = vadd.f32 %v1489_v20, %v1484_v18  ;;  %v1493_v26 = vadd.f32 %v1489_v20, %v1485_v19 }
 0x586   :  { %v1498_v27 = vadd.f32 %v1494_v11, %v1490_v24  ;;  %v1499_v28 = vadd.f32 %v1495_v0, %v1491_v25  ;;  %v1500_v29 = vadd.f32 %v1496_v21, %v1492_v36  ;;  %v1501_v44 = vadd.f32 %v1497_v22, %v1493_v26 }
 0x588   :  { %vm1502_vm8 = vcmp.ge.f32.partialorder %v1498_v27, 0.0  ;;  %vm1503_vm9 = vcmp.ge.f32.partialorder %v1499_v28, 0.0  ;;  %vm1504_vm10 = vcmp.ge.f32.partialorder %v1500_v29, 0.0  ;;  %vm1505_vm11 = vcmp.ge.f32.partialorder %v1501_v44, 0.0 }
 0x589   :  { %v1506_v30 = vmul.f32 0.01, %v1498_v27  ;;  %v1507_v58 = vmul.f32 0.01, %v1499_v28  ;;  %v1508_v54 = vmul.f32 0.01, %v1500_v29 }
 0x58a   :  { %v1509_v59 = vmul.f32 0.01, %v1501_v44 }
 0x58b   :  { %v1510_v31 = vsel %vm1502_vm8, %v1498_v27, %v1506_v30  ;;  %v1511_v53 = vsel %vm1503_vm9, %v1499_v28, %v1507_v58  ;;  %v1512_v60 = vsel %vm1504_vm10, %v1500_v29, %v1508_v54 }
 0x58c   :  { %v1513_v61 = vsel %vm1505_vm11, %v1501_v44, %v1509_v59  ;;  %1514 = vst [vmem:[#allocation8] sm:$0xff] %v1510_v31  ;;  %1515 = vst [vmem:[#allocation8 + $0x8] sm:$0xff] %v1511_v53 }
 0x58d   :  { %1516 = vst [vmem:[#allocation8 + $0x10] sm:$0xff] %v1512_v60  ;;  %1517 = vst [vmem:[#allocation8 + $0x18] sm:$0xff] %v1513_v61 }
 0x58e   :  { %2186 = shalt.err (!%p2183_p0)
}
 0x58f   :  { %1529 = dma.vmem_to_hbm [thread:$0]  %s1524_s30, 512, %s2662_s9, [#allocation5], %s2202_s12, %s2202_s12, %s2203_s13  }
 0x590   :  { %2199 = dma.done.wait [#allocation5], 512  }
 0x591   :  { %2200 = vsyncadd [#allocation5], 4294966784 }
 0x592   :  { %1533 = vsyncpa [#allocation4], 1 }
 0x593   :  { %1534 = vsyncpa [#allocation7], 1 }
 0x594   :  { %1535 = vsyncpa [#allocation5], 1 }

</bundles_post_ra>
